<compile_context>
chip_gen: v6e
topology: v6e:2x2x1
jax: 0.10.0
libtpu: 0.0.40
codegen_flags: <defaults>
</compile_context>

<pallas_src>
import functools

import jax
import jax.numpy as jnp
from jax.experimental import pallas as pl
from jax.experimental.pallas import tpu as pltpu


def _round_up(v, m):
    return ((v + m - 1) // m) * m


# ----------------------------------------------------------------------------
# Fused kernel: whole network for one (batch, point-tile) block.
# ----------------------------------------------------------------------------
def _fused_inr_kernel(x_ref, gains_ref, biases_ref, w0_ref, b0_ref,
                      wh_ref, bh_ref, wr_ref, br_ref, o_ref,
                      *, hidden_layers, hidden_dim):
    inv_h = 1.0 / float(hidden_dim)
    eps = 1e-5

    x_t = x_ref[0]                    # (Din, TN)  channel-first, lane-dense
    gains = gains_ref[0]              # (L, H_pad) zero-padded beyond hidden_dim
    biases = biases_ref[0]            # (L, H_pad)
    bh_all = bh_ref[...]              # (Lm1, H_pad)

    def cln_leaky(h, gain, bias):
        # Padded columns of h are exactly 0 (zero-padded weights & biases), so
        # lane sums over H_pad equal sums over the true hidden_dim; statistics
        # divide by the TRUE hidden_dim -> exact F.layer_norm semantics.
        # E[x^2] - mean^2 avoids a second masked centering pass.
        s1 = jnp.sum(h, axis=-1, keepdims=True)
        s2 = jnp.sum(h * h, axis=-1, keepdims=True)
        mean = s1 * inv_h
        var = s2 * inv_h - mean * mean
        hn = (h - mean) * jax.lax.rsqrt(var + eps)
        out = hn * (1.0 + gain) + bias
        # NOTE: if a bundle dump shows the XLU (lane reductions/broadcasts)
        # stealing extended-issue slots from vmatmul, the statistics can instead
        # be computed via an extra matmul against inv_h * ones(H_pad, H_pad).
        return jnp.maximum(out, 0.2 * out)        # LeakyReLU(0.2)

    # Layer 0: x_t^T @ w0 : (Din, TN)^T x (Din, H_pad) -> (TN, H_pad)  [trans_a]
    h = jax.lax.dot_general(
        x_t, w0_ref[...],
        dimension_numbers=(((0,), (0,)), ((), ())),
        preferred_element_type=jnp.float32) + b0_ref[...]
    h = cln_leaky(h, gains[0:1, :], biases[0:1, :])

    # Hidden layers 1..L-1 (static Python unroll; weights already VMEM-resident)
    for i in range(1, hidden_layers):
        h = jnp.dot(h.astype(wh_ref.dtype), wh_ref[i - 1],
                    preferred_element_type=jnp.float32) + bh_all[i - 1:i, :]
        h = cln_leaky(h, gains[i:i + 1, :], biases[i:i + 1, :])

    # to_rgb transposed: (R, H_pad) x (TN, H_pad)^T -> (R, TN)  [trans_b]
    # M=R keeps MXU pushes minimal and the (R, TN) result is lane-dense for the
    # writeback.  Padded columns of wr_t are zero, so padded h columns are inert.
    rgb_t = jax.lax.dot_general(
        wr_ref[...], h.astype(wr_ref.dtype),
        dimension_numbers=(((1,), (1,)), ((), ())),
        preferred_element_type=jnp.float32) + br_ref[...]
    o_ref[0] = jnp.tanh(rgb_t).astype(o_ref.dtype)


# ----------------------------------------------------------------------------
# Parameter init (shapes match the PyTorch module; weights pre-transposed).
# ----------------------------------------------------------------------------
def init_inr_params(key, input_dim, hidden_dim, hidden_layers, rgb_dim=3):
    params = {"layers": []}
    for i in range(hidden_layers):
        in_dim = input_dim if i == 0 else hidden_dim
        key, kw, kb = jax.random.split(key, 3)
        bound = 1.0 / jnp.sqrt(in_dim)
        w = jax.random.uniform(kw, (in_dim, hidden_dim), jnp.float32, -bound, bound)
        b = jax.random.uniform(kb, (1, hidden_dim), jnp.float32, -bound, bound)
        params["layers"].append((w, b))
    # to_rgb: frequency_init(25) -> uniform(+-sqrt(6/in)/25)
    key, kw, kb = jax.random.split(key, 3)
    fbound = jnp.sqrt(6.0 / hidden_dim) / 25.0
    params["rgb_w"] = jax.random.uniform(
        kw, (hidden_dim, rgb_dim), jnp.float32, -fbound, fbound)
    params["rgb_b"] = jax.random.uniform(
        kb, (1, rgb_dim), jnp.float32, -1.0 / jnp.sqrt(hidden_dim),
        1.0 / jnp.sqrt(hidden_dim))
    return params


# ----------------------------------------------------------------------------
# Forward: one fused pallas_call for the whole network.
# ----------------------------------------------------------------------------
@functools.partial(jax.jit, static_argnames=("name_prefix", "tile_n"))
def inr_network_cln_forward(x, params, style_dict, name_prefix="inr", tile_n=4096):
    """x: (B, num_points, input_dim) -> (B, num_points, rgb_dim)."""
    B, N, Din = x.shape
    layers = params["layers"]
    L = len(layers)
    H = layers[0][0].shape[1]
    R = params["rgb_w"].shape[1]
    H_pad = _round_up(max(H, 128), 128)          # lane-dense internal width

    # ---- pad & stack parameters (zero padding keeps padded columns exactly 0) ----
    w0 = jnp.pad(layers[0][0], ((0, 0), (0, H_pad - H)))          # (Din, H_pad) f32
    b0 = jnp.pad(layers[0][1], ((0, 0), (0, H_pad - H)))          # (1, H_pad)   f32
    if L > 1:
        wh = jnp.stack([jnp.pad(w, ((0, H_pad - H), (0, H_pad - H)))
                        for (w, _) in layers[1:]], axis=0).astype(jnp.bfloat16)
        bh = jnp.stack([jnp.pad(b[0], (0, H_pad - H))
                        for (_, b) in layers[1:]], axis=0)        # (L-1, H_pad) f32
    else:
        wh = jnp.zeros((1, H_pad, H_pad), jnp.bfloat16)
        bh = jnp.zeros((1, H_pad), jnp.float32)
    Lm1 = wh.shape[0]
    # rgb weight stored transposed + lane-dense: (R, H_pad), bf16
    wr_t = jnp.pad(params["rgb_w"], ((0, H_pad - H), (0, 0))).T.astype(jnp.bfloat16)
    br = params["rgb_b"].T                                        # (R, 1) f32

    # ---- styles: pre-split gain / bias, pad, stack over layers -> (B, L, H_pad) ----
    gain_l, bias_l = [], []
    for i in range(L):
        s = style_dict[f"{name_prefix}_cln_{i}"]                  # (B, 2H)
        gain_l.append(jnp.pad(s[:, :H], ((0, 0), (0, H_pad - H))))
        bias_l.append(jnp.pad(s[:, H:], ((0, 0), (0, H_pad - H))))
    gains = jnp.stack(gain_l, axis=1)
    biases = jnp.stack(bias_l, axis=1)

    # ---- tile the point dimension (lane axis) ----
    TN = min(_round_up(tile_n, 128), _round_up(N, 128))
    if B == 1:
        # v7x has 2 TensorCores: make sure the grid has >= 2 steps when possible.
        TN = min(TN, max(128, _round_up((N + 1) // 2, 128)))
    N_pad = _round_up(N, TN)
    NT = N_pad // TN

    # channel-first points (B, Din, N_pad): lane-dense tiles, contiguous DMA rows.
    x_t = jnp.transpose(x, (0, 2, 1))
    if N_pad != N:
        x_t = jnp.pad(x_t, ((0, 0), (0, 0), (0, N_pad - N)))  # fuses with transpose

    kernel = functools.partial(_fused_inr_kernel, hidden_layers=L, hidden_dim=H)

    flops = 2 * B * N_pad * (Din * H_pad + (L - 1) * H_pad * H_pad + H_pad * R)
    transcendentals = B * N_pad * (L + R)
    bytes_accessed = (4 * B * N_pad * (Din + R)
                      + 4 * (w0.size + b0.size + bh.size + br.size
                             + gains.size + biases.size)
                      + 2 * (wh.size + wr_t.size))

    out_t = pl.pallas_call(
        kernel,
        out_shape=jax.ShapeDtypeStruct((B, R, N_pad), jnp.float32),
        grid=(B, NT),
        in_specs=[
            pl.BlockSpec((1, Din, TN), lambda b, n: (b, 0, n)),       # points (cf)
            pl.BlockSpec((1, L, H_pad), lambda b, n: (b, 0, 0)),      # gains
            pl.BlockSpec((1, L, H_pad), lambda b, n: (b, 0, 0)),      # biases
            pl.BlockSpec((Din, H_pad), lambda b, n: (0, 0)),          # w0
            pl.BlockSpec((1, H_pad), lambda b, n: (0, 0)),            # b0
            pl.BlockSpec((Lm1, H_pad, H_pad), lambda b, n: (0, 0, 0)),  # hidden Ws
            pl.BlockSpec((Lm1, H_pad), lambda b, n: (0, 0)),          # hidden bs
            pl.BlockSpec((R, H_pad), lambda b, n: (0, 0)),            # rgb W^T
            pl.BlockSpec((R, 1), lambda b, n: (0, 0)),                # rgb b
        ],
        out_specs=pl.BlockSpec((1, R, TN), lambda b, n: (b, 0, n)),   # rgb (cf)
        compiler_params=pltpu.CompilerParams(
            dimension_semantics=("parallel", "parallel"),
            vmem_limit_bytes=48 * 1024 * 1024),
        cost_estimate=pl.CostEstimate(flops=flops,
                                      transcendentals=transcendentals,
                                      bytes_accessed=bytes_accessed),
    )(x_t, gains, biases, w0, b0, wh, bh, wr_t, br)

    # back to module layout (B, num_points, rgb_dim)
    return jnp.transpose(out_t[:, :, :N], (0, 2, 1))


# ----------------------------------------------------------------------------
# Pure-JAX reference (sanity check only).
# ----------------------------------------------------------------------------
def _reference_forward(x, params, style_dict, name_prefix="inr"):
    for i, (w, b) in enumerate(params["layers"]):
        h = jnp.einsum("bnd,dh->bnh", x, w) + b[None]
        mean = jnp.mean(h, axis=-1, keepdims=True)
        var = jnp.mean((h - mean) ** 2, axis=-1, keepdims=True)
        hn = (h - mean) / jnp.sqrt(var + 1e-5)
        style = style_dict[f"{name_prefix}_cln_{i}"]
        H = h.shape[-1]
        gain = style[:, None, :H]
        bias = style[:, None, H:]
        h = hn * (1.0 + gain) + bias
        x = jnp.where(h >= 0.0, h, 0.2 * h)
    out = jnp.einsum("bnh,hr->bnr", x, params["rgb_w"]) + params["rgb_b"][None]
    return jnp.tanh(out)


if __name__ == "__main__":
    # Small shapes consistent with the module: points xyz -> rgb.
    B, N = 2, 64
    input_dim, hidden_dim, hidden_layers, rgb_dim = 3, 32, 3, 3

    key = jax.random.PRNGKey(0)
    key, kx, kp, ks = jax.random.split(key, 4)

    x = jax.random.normal(kx, (B, N, input_dim), jnp.float32)
    params = init_inr_params(kp, input_dim, hidden_dim, hidden_layers, rgb_dim)

    style_dict = {}
    for i in range(hidden_layers):
        ks, sub = jax.random.split(ks)
        style_dict[f"inr_cln_{i}"] = 0.1 * jax.random.normal(
            sub, (B, 2 * hidden_dim), jnp.float32)

    out = inr_network_cln_forward(x, params, style_dict)
    out = jax.block_until_ready(out)

    ref = _reference_forward(x, params, style_dict)
    assert out.shape == (B, N, rgb_dim)
    # bf16 MXU operands (same as TPU DEFAULT precision) + E[x^2]-mean^2 variance:
    # allow a small tolerance vs the f32-traced reference.
    assert jnp.allclose(out, ref, atol=2e-3, rtol=2e-3), "mismatch vs reference"

    print("KERNEL_OK")
</pallas_src>

<mosaic_0001>
module attributes {stable_mosaic.version = 11 : i64} {
  func.func @_fused_inr_kernel(%arg0: i32, %arg1: i32, %arg2: memref<1x3x128xf32, #tpu.memory_space<vmem>>, %arg3: memref<1x3x128xf32, #tpu.memory_space<vmem>>, %arg4: memref<1x3x128xf32, #tpu.memory_space<vmem>>, %arg5: memref<3x128xf32, #tpu.memory_space<vmem>>, %arg6: memref<1x128xf32, #tpu.memory_space<vmem>>, %arg7: memref<2x128x128xbf16, #tpu.memory_space<vmem>>, %arg8: memref<2x128xf32, #tpu.memory_space<vmem>>, %arg9: memref<3x128xbf16, #tpu.memory_space<vmem>>, %arg10: memref<3x1xf32, #tpu.memory_space<vmem>>, %arg11: memref<1x3x128xf32, #tpu.memory_space<vmem>>) attributes {dimension_semantics = [#tpu.dimension_semantics<parallel>, #tpu.dimension_semantics<parallel>], iteration_bounds = array<i64: 2, 1>, scalar_prefetch = 0 : i64, scratch_operands = 0 : i64, tpu.core_type = #tpu.core_type<tc>, window_params = [{transform_indices = @transform_0, window_bounds = array<i64: 1, 3, 128>}, {transform_indices = @transform_1, window_bounds = array<i64: 1, 3, 128>}, {transform_indices = @transform_2, window_bounds = array<i64: 1, 3, 128>}, {pipeline_mode = #tpu.pipeline_mode<synchronous>, transform_indices = @transform_3, window_bounds = array<i64: 3, 128>}, {pipeline_mode = #tpu.pipeline_mode<synchronous>, transform_indices = @transform_4, window_bounds = array<i64: 1, 128>}, {pipeline_mode = #tpu.pipeline_mode<synchronous>, transform_indices = @transform_5, window_bounds = array<i64: 2, 128, 128>}, {pipeline_mode = #tpu.pipeline_mode<synchronous>, transform_indices = @transform_6, window_bounds = array<i64: 2, 128>}, {pipeline_mode = #tpu.pipeline_mode<synchronous>, transform_indices = @transform_7, window_bounds = array<i64: 3, 128>}, {pipeline_mode = #tpu.pipeline_mode<synchronous>, transform_indices = @transform_8, window_bounds = array<i64: 3, 1>}, {transform_indices = @transform_9, window_bounds = array<i64: 1, 3, 128>}]} {
    %c0 = arith.constant 0 : index
    %c0_0 = arith.constant 0 : index
    %c0_1 = arith.constant 0 : index
    %0 = vector.load %arg2[%c0, %c0_0, %c0_1] : memref<1x3x128xf32, #tpu.memory_space<vmem>>, vector<1x3x128xf32>
    %1 = vector.shape_cast %0 : vector<1x3x128xf32> to vector<3x128xf32>
    %c0_2 = arith.constant 0 : index
    %c0_3 = arith.constant 0 : index
    %c0_4 = arith.constant 0 : index
    %2 = vector.load %arg3[%c0_2, %c0_3, %c0_4] : memref<1x3x128xf32, #tpu.memory_space<vmem>>, vector<1x3x128xf32>
    %3 = vector.shape_cast %2 : vector<1x3x128xf32> to vector<3x128xf32>
    %c0_5 = arith.constant 0 : index
    %c0_6 = arith.constant 0 : index
    %c0_7 = arith.constant 0 : index
    %4 = vector.load %arg4[%c0_5, %c0_6, %c0_7] : memref<1x3x128xf32, #tpu.memory_space<vmem>>, vector<1x3x128xf32>
    %5 = vector.shape_cast %4 : vector<1x3x128xf32> to vector<3x128xf32>
    %c0_8 = arith.constant 0 : index
    %c0_9 = arith.constant 0 : index
    %6 = vector.load %arg8[%c0_8, %c0_9] : memref<2x128xf32, #tpu.memory_space<vmem>>, vector<2x128xf32>
    %c0_10 = arith.constant 0 : index
    %c0_11 = arith.constant 0 : index
    %7 = vector.load %arg5[%c0_10, %c0_11] : memref<3x128xf32, #tpu.memory_space<vmem>>, vector<3x128xf32>
    %cst = arith.constant dense<0.000000e+00> : vector<128x128xf32>
    %8 = tpu.matmul %1, %7, %cst {dimension_numbers = #tpu.dot_dimension_numbers<[0], [0], [1], [1], [0, 1, 1, 1], [], []>} : vector<3x128xf32>, vector<3x128xf32>, vector<128x128xf32> -> vector<128x128xf32>
    %c0_12 = arith.constant 0 : index
    %c0_13 = arith.constant 0 : index
    %9 = vector.load %arg6[%c0_12, %c0_13] : memref<1x128xf32, #tpu.memory_space<vmem>>, vector<1x128xf32>
    %10 = vector.broadcast %9 : vector<1x128xf32> to vector<128x128xf32>
    %11 = arith.addf %8, %10 : vector<128x128xf32>
    %12 = vector.extract_strided_slice %3 {offsets = [0, 0], sizes = [1, 128], strides = [1, 1]} : vector<3x128xf32> to vector<1x128xf32>
    %13 = vector.extract_strided_slice %5 {offsets = [0, 0], sizes = [1, 128], strides = [1, 1]} : vector<3x128xf32> to vector<1x128xf32>
    %cst_14 = arith.constant dense<0.000000e+00> : vector<128xf32>
    %14 = vector.multi_reduction <add>, %11, %cst_14 [1] : vector<128x128xf32> to vector<128xf32>
    %15 = vector.shape_cast %14 : vector<128xf32> to vector<128x1xf32>
    %16 = arith.mulf %11, %11 : vector<128x128xf32>
    %cst_15 = arith.constant dense<0.000000e+00> : vector<128xf32>
    %17 = vector.multi_reduction <add>, %16, %cst_15 [1] : vector<128x128xf32> to vector<128xf32>
    %18 = vector.shape_cast %17 : vector<128xf32> to vector<128x1xf32>
    %cst_16 = arith.constant 3.125000e-02 : f32
    %19 = vector.broadcast %cst_16 : f32 to vector<128x1xf32>
    %20 = arith.mulf %15, %19 : vector<128x1xf32>
    %cst_17 = arith.constant 3.125000e-02 : f32
    %21 = vector.broadcast %cst_17 : f32 to vector<128x1xf32>
    %22 = arith.mulf %18, %21 : vector<128x1xf32>
    %23 = arith.mulf %20, %20 : vector<128x1xf32>
    %24 = arith.subf %22, %23 : vector<128x1xf32>
    %25 = vector.broadcast %20 : vector<128x1xf32> to vector<128x128xf32>
    %26 = arith.subf %11, %25 : vector<128x128xf32>
    %cst_18 = arith.constant 9.99999974E-6 : f32
    %27 = vector.broadcast %cst_18 : f32 to vector<128x1xf32>
    %28 = arith.addf %24, %27 : vector<128x1xf32>
    %29 = math.rsqrt %28 : vector<128x1xf32>
    %30 = vector.broadcast %29 : vector<128x1xf32> to vector<128x128xf32>
    %31 = arith.mulf %26, %30 : vector<128x128xf32>
    %cst_19 = arith.constant 1.000000e+00 : f32
    %32 = vector.broadcast %cst_19 : f32 to vector<1x128xf32>
    %33 = arith.addf %32, %12 : vector<1x128xf32>
    %34 = vector.broadcast %33 : vector<1x128xf32> to vector<128x128xf32>
    %35 = arith.mulf %31, %34 : vector<128x128xf32>
    %36 = vector.broadcast %13 : vector<1x128xf32> to vector<128x128xf32>
    %37 = arith.addf %35, %36 : vector<128x128xf32>
    %cst_20 = arith.constant 2.000000e-01 : f32
    %38 = vector.broadcast %cst_20 : f32 to vector<128x128xf32>
    %39 = arith.mulf %38, %37 : vector<128x128xf32>
    %40 = arith.maximumf %37, %39 : vector<128x128xf32>
    %41 = arith.truncf %40 : vector<128x128xf32> to vector<128x128xbf16>
    %c0_21 = arith.constant 0 : index
    %c0_22 = arith.constant 0 : index
    %c0_23 = arith.constant 0 : index
    %42 = vector.load %arg7[%c0_21, %c0_22, %c0_23] : memref<2x128x128xbf16, #tpu.memory_space<vmem>>, vector<1x128x128xbf16>
    %43 = vector.shape_cast %42 : vector<1x128x128xbf16> to vector<128x128xbf16>
    %cst_24 = arith.constant dense<0.000000e+00> : vector<128x128xf32>
    %44 = tpu.matmul %41, %43, %cst_24 {dimension_numbers = #tpu.dot_dimension_numbers<[1], [0], [0], [1], [0, 0, 1, 1], [], []>} : vector<128x128xbf16>, vector<128x128xbf16>, vector<128x128xf32> -> vector<128x128xf32>
    %45 = vector.extract_strided_slice %6 {offsets = [0, 0], sizes = [1, 128], strides = [1, 1]} : vector<2x128xf32> to vector<1x128xf32>
    %46 = vector.broadcast %45 : vector<1x128xf32> to vector<128x128xf32>
    %47 = arith.addf %44, %46 : vector<128x128xf32>
    %48 = vector.extract_strided_slice %3 {offsets = [1, 0], sizes = [1, 128], strides = [1, 1]} : vector<3x128xf32> to vector<1x128xf32>
    %49 = vector.extract_strided_slice %5 {offsets = [1, 0], sizes = [1, 128], strides = [1, 1]} : vector<3x128xf32> to vector<1x128xf32>
    %cst_25 = arith.constant dense<0.000000e+00> : vector<128xf32>
    %50 = vector.multi_reduction <add>, %47, %cst_25 [1] : vector<128x128xf32> to vector<128xf32>
    %51 = vector.shape_cast %50 : vector<128xf32> to vector<128x1xf32>
    %52 = arith.mulf %47, %47 : vector<128x128xf32>
    %cst_26 = arith.constant dense<0.000000e+00> : vector<128xf32>
    %53 = vector.multi_reduction <add>, %52, %cst_26 [1] : vector<128x128xf32> to vector<128xf32>
    %54 = vector.shape_cast %53 : vector<128xf32> to vector<128x1xf32>
    %cst_27 = arith.constant 3.125000e-02 : f32
    %55 = vector.broadcast %cst_27 : f32 to vector<128x1xf32>
    %56 = arith.mulf %51, %55 : vector<128x1xf32>
    %cst_28 = arith.constant 3.125000e-02 : f32
    %57 = vector.broadcast %cst_28 : f32 to vector<128x1xf32>
    %58 = arith.mulf %54, %57 : vector<128x1xf32>
    %59 = arith.mulf %56, %56 : vector<128x1xf32>
    %60 = arith.subf %58, %59 : vector<128x1xf32>
    %61 = vector.broadcast %56 : vector<128x1xf32> to vector<128x128xf32>
    %62 = arith.subf %47, %61 : vector<128x128xf32>
    %cst_29 = arith.constant 9.99999974E-6 : f32
    %63 = vector.broadcast %cst_29 : f32 to vector<128x1xf32>
    %64 = arith.addf %60, %63 : vector<128x1xf32>
    %65 = math.rsqrt %64 : vector<128x1xf32>
    %66 = vector.broadcast %65 : vector<128x1xf32> to vector<128x128xf32>
    %67 = arith.mulf %62, %66 : vector<128x128xf32>
    %cst_30 = arith.constant 1.000000e+00 : f32
    %68 = vector.broadcast %cst_30 : f32 to vector<1x128xf32>
    %69 = arith.addf %68, %48 : vector<1x128xf32>
    %70 = vector.broadcast %69 : vector<1x128xf32> to vector<128x128xf32>
    %71 = arith.mulf %67, %70 : vector<128x128xf32>
    %72 = vector.broadcast %49 : vector<1x128xf32> to vector<128x128xf32>
    %73 = arith.addf %71, %72 : vector<128x128xf32>
    %cst_31 = arith.constant 2.000000e-01 : f32
    %74 = vector.broadcast %cst_31 : f32 to vector<128x128xf32>
    %75 = arith.mulf %74, %73 : vector<128x128xf32>
    %76 = arith.maximumf %73, %75 : vector<128x128xf32>
    %77 = arith.truncf %76 : vector<128x128xf32> to vector<128x128xbf16>
    %c1 = arith.constant 1 : index
    %c0_32 = arith.constant 0 : index
    %c0_33 = arith.constant 0 : index
    %78 = vector.load %arg7[%c1, %c0_32, %c0_33] : memref<2x128x128xbf16, #tpu.memory_space<vmem>>, vector<1x128x128xbf16>
    %79 = vector.shape_cast %78 : vector<1x128x128xbf16> to vector<128x128xbf16>
    %cst_34 = arith.constant dense<0.000000e+00> : vector<128x128xf32>
    %80 = tpu.matmul %77, %79, %cst_34 {dimension_numbers = #tpu.dot_dimension_numbers<[1], [0], [0], [1], [0, 0, 1, 1], [], []>} : vector<128x128xbf16>, vector<128x128xbf16>, vector<128x128xf32> -> vector<128x128xf32>
    %81 = vector.extract_strided_slice %6 {offsets = [1, 0], sizes = [1, 128], strides = [1, 1]} : vector<2x128xf32> to vector<1x128xf32>
    %82 = vector.broadcast %81 : vector<1x128xf32> to vector<128x128xf32>
    %83 = arith.addf %80, %82 : vector<128x128xf32>
    %84 = vector.extract_strided_slice %3 {offsets = [2, 0], sizes = [1, 128], strides = [1, 1]} : vector<3x128xf32> to vector<1x128xf32>
    %85 = vector.extract_strided_slice %5 {offsets = [2, 0], sizes = [1, 128], strides = [1, 1]} : vector<3x128xf32> to vector<1x128xf32>
    %cst_35 = arith.constant dense<0.000000e+00> : vector<128xf32>
    %86 = vector.multi_reduction <add>, %83, %cst_35 [1] : vector<128x128xf32> to vector<128xf32>
    %87 = vector.shape_cast %86 : vector<128xf32> to vector<128x1xf32>
    %88 = arith.mulf %83, %83 : vector<128x128xf32>
    %cst_36 = arith.constant dense<0.000000e+00> : vector<128xf32>
    %89 = vector.multi_reduction <add>, %88, %cst_36 [1] : vector<128x128xf32> to vector<128xf32>
    %90 = vector.shape_cast %89 : vector<128xf32> to vector<128x1xf32>
    %cst_37 = arith.constant 3.125000e-02 : f32
    %91 = vector.broadcast %cst_37 : f32 to vector<128x1xf32>
    %92 = arith.mulf %87, %91 : vector<128x1xf32>
    %cst_38 = arith.constant 3.125000e-02 : f32
    %93 = vector.broadcast %cst_38 : f32 to vector<128x1xf32>
    %94 = arith.mulf %90, %93 : vector<128x1xf32>
    %95 = arith.mulf %92, %92 : vector<128x1xf32>
    %96 = arith.subf %94, %95 : vector<128x1xf32>
    %97 = vector.broadcast %92 : vector<128x1xf32> to vector<128x128xf32>
    %98 = arith.subf %83, %97 : vector<128x128xf32>
    %cst_39 = arith.constant 9.99999974E-6 : f32
    %99 = vector.broadcast %cst_39 : f32 to vector<128x1xf32>
    %100 = arith.addf %96, %99 : vector<128x1xf32>
    %101 = math.rsqrt %100 : vector<128x1xf32>
    %102 = vector.broadcast %101 : vector<128x1xf32> to vector<128x128xf32>
    %103 = arith.mulf %98, %102 : vector<128x128xf32>
    %cst_40 = arith.constant 1.000000e+00 : f32
    %104 = vector.broadcast %cst_40 : f32 to vector<1x128xf32>
    %105 = arith.addf %104, %84 : vector<1x128xf32>
    %106 = vector.broadcast %105 : vector<1x128xf32> to vector<128x128xf32>
    %107 = arith.mulf %103, %106 : vector<128x128xf32>
    %108 = vector.broadcast %85 : vector<1x128xf32> to vector<128x128xf32>
    %109 = arith.addf %107, %108 : vector<128x128xf32>
    %cst_41 = arith.constant 2.000000e-01 : f32
    %110 = vector.broadcast %cst_41 : f32 to vector<128x128xf32>
    %111 = arith.mulf %110, %109 : vector<128x128xf32>
    %112 = arith.maximumf %109, %111 : vector<128x128xf32>
    %c0_42 = arith.constant 0 : index
    %c0_43 = arith.constant 0 : index
    %113 = vector.load %arg9[%c0_42, %c0_43] : memref<3x128xbf16, #tpu.memory_space<vmem>>, vector<3x128xbf16>
    %114 = arith.truncf %112 : vector<128x128xf32> to vector<128x128xbf16>
    %cst_44 = arith.constant dense<0.000000e+00> : vector<3x128xf32>
    %115 = tpu.matmul %113, %114, %cst_44 {dimension_numbers = #tpu.dot_dimension_numbers<[1], [1], [0], [0], [0, 0, 1, 0], [], []>} : vector<3x128xbf16>, vector<128x128xbf16>, vector<3x128xf32> -> vector<3x128xf32>
    %c0_45 = arith.constant 0 : index
    %c0_46 = arith.constant 0 : index
    %116 = vector.load %arg10[%c0_45, %c0_46] : memref<3x1xf32, #tpu.memory_space<vmem>>, vector<3x1xf32>
    %117 = vector.broadcast %116 : vector<3x1xf32> to vector<3x128xf32>
    %118 = arith.addf %115, %117 : vector<3x128xf32>
    %119 = math.tanh %118 : vector<3x128xf32>
    %c0_47 = arith.constant 0 : index
    %c0_48 = arith.constant 0 : index
    %c0_49 = arith.constant 0 : index
    %120 = vector.load %arg11[%c0_47, %c0_48, %c0_49] : memref<1x3x128xf32, #tpu.memory_space<vmem>>, vector<1x3x128xf32>
    %121 = vector.shape_cast %120 : vector<1x3x128xf32> to vector<3x128xf32>
    %122 = vector.shape_cast %119 : vector<3x128xf32> to vector<1x3x128xf32>
    tpu.vector_store %arg11[%c0_47, %c0_48, %c0_49], %122 {strides = array<i32>} : memref<1x3x128xf32, #tpu.memory_space<vmem>>, vector<1x3x128xf32>,
    return
  }
  func.func @transform_0(%arg0: i32, %arg1: i32) -> (i32, i32, i32) {
    %c0_i32 = arith.constant 0 : i32
    %c0_i32_0 = arith.constant 0 : i32
    return %arg0, %c0_i32, %arg1 : i32, i32, i32
  }
  func.func @transform_1(%arg0: i32, %arg1: i32) -> (i32, i32, i32) {
    %c0_i32 = arith.constant 0 : i32
    %c0_i32_0 = arith.constant 0 : i32
    %c0_i32_1 = arith.constant 0 : i32
    return %arg0, %c0_i32, %c0_i32_0 : i32, i32, i32
  }
  func.func @transform_2(%arg0: i32, %arg1: i32) -> (i32, i32, i32) {
    %c0_i32 = arith.constant 0 : i32
    %c0_i32_0 = arith.constant 0 : i32
    %c0_i32_1 = arith.constant 0 : i32
    return %arg0, %c0_i32, %c0_i32_0 : i32, i32, i32
  }
  func.func @transform_3(%arg0: i32, %arg1: i32) -> (i32, i32) {
    %c0_i32 = arith.constant 0 : i32
    %c0_i32_0 = arith.constant 0 : i32
    %c0_i32_1 = arith.constant 0 : i32
    return %c0_i32, %c0_i32_0 : i32, i32
  }
  func.func @transform_4(%arg0: i32, %arg1: i32) -> (i32, i32) {
    %c0_i32 = arith.constant 0 : i32
    %c0_i32_0 = arith.constant 0 : i32
    %c0_i32_1 = arith.constant 0 : i32
    return %c0_i32, %c0_i32_0 : i32, i32
  }
  func.func @transform_5(%arg0: i32, %arg1: i32) -> (i32, i32, i32) {
    %c0_i32 = arith.constant 0 : i32
    %c0_i32_0 = arith.constant 0 : i32
    %c0_i32_1 = arith.constant 0 : i32
    %c0_i32_2 = arith.constant 0 : i32
    return %c0_i32, %c0_i32_0, %c0_i32_1 : i32, i32, i32
  }
  func.func @transform_6(%arg0: i32, %arg1: i32) -> (i32, i32) {
    %c0_i32 = arith.constant 0 : i32
    %c0_i32_0 = arith.constant 0 : i32
    %c0_i32_1 = arith.constant 0 : i32
    return %c0_i32, %c0_i32_0 : i32, i32
  }
  func.func @transform_7(%arg0: i32, %arg1: i32) -> (i32, i32) {
    %c0_i32 = arith.constant 0 : i32
    %c0_i32_0 = arith.constant 0 : i32
    %c0_i32_1 = arith.constant 0 : i32
    return %c0_i32, %c0_i32_0 : i32, i32
  }
  func.func @transform_8(%arg0: i32, %arg1: i32) -> (i32, i32) {
    %c0_i32 = arith.constant 0 : i32
    %c0_i32_0 = arith.constant 0 : i32
    %c0_i32_1 = arith.constant 0 : i32
    return %c0_i32, %c0_i32_0 : i32, i32
  }
  func.func @transform_9(%arg0: i32, %arg1: i32) -> (i32, i32, i32) {
    %c0_i32 = arith.constant 0 : i32
    %c0_i32_0 = arith.constant 0 : i32
    return %arg0, %c0_i32, %arg1 : i32, i32, i32
  }
}

</mosaic_0001>

<bundles_post_ra>
// kernel: inr_network_cln_forward.1
= control target key start
LH: loop header
LB: loop body
LE: loop exit
PB: predicated region body
PF: predicated region fallthrough
CT: control target
= control target key end

     0   :  { %s2428_s30 = smov 0   ;;  %s2430_s10 = smov 0   ;;  %s3105_s0 = inlined_call_operand.vmem [shape: f32[2,3,128], index: 0, kind: input, shape index: {}]   ;;  %s3106_s1 = inlined_call_operand.vmem [shape: f32[2,3,128], index: 1, kind: input, shape index: {}]   ;;  %s3107_s2 = inlined_call_operand.vmem [shape: f32[2,3,128], index: 2, kind: input, shape index: {}]   ;;  %s3108_s3 = inlined_call_operand.vmem [shape: f32[3,128], index: 3, kind: input, shape index: {}]   ;;  %s3109_s4 = inlined_call_operand.vmem [shape: f32[1,128], index: 4, kind: input, shape index: {}]   ;;  %s3110_s5 = inlined_call_operand.vmem [shape: bf16[2,128,128], index: 5, kind: input, shape index: {}]   ;;  %s3111_s6 = inlined_call_operand.vmem [shape: f32[2,128], index: 6, kind: input, shape index: {}]   ;;  %s3112_s7 = inlined_call_operand.vmem [shape: bf16[3,128], index: 7, kind: input, shape index: {}]   ;;  %s3113_s8 = inlined_call_operand.vmem [shape: f32[3,1], index: 8, kind: input, shape index: {}]   ;;  %s3114_s9 = inlined_call_operand.vmem [shape: f32[2,3,128], index: 9, kind: output, shape index: {}]  }
   0x1   :  { %s2432_s11 = smov 0  }
   0x2 LB: > { %s31_s12 = sadd.s32 1, %s2369_s10  ;;  %p1983_p0 = scmp.ge.s32.totalorder %s2373_s11, 1  ;;  %s2373_s11 = sphi %s2432_s11, %s19_s11   ;;  %s2369_s10 = sphi %s2430_s10, %s3116_s10   ;;  %s2365_s30 = sphi %s2428_s30, %s3115_s30  }
   0x3   : > { %p33_p1 = scmp.ge.s32.totalorder %s31_s12, 2  ;;  %p323_p2 = scmp.lt.s32.totalorder %s2373_s11, 3 }
   0x5   : > { %s3118_s12 = smov (%p33_p1, %s31_s12), 0  ;;  %p324_p3 = pnand %p1983_p0, %p323_p2 }
   0x6   : > { %p371_p4 = scmp.lt.s32.totalorder (!%p324_p3), %s2365_s30, 1 }
   0x7   : > { %327 = sbr.rel (%p324_p3) target bundleno = 1650 (0x672), region = 56 }
   0xc   : > { %v845_v0 = vlaneseq  ;;  %s3120_s30 = smov (!%p371_p4, %s2365_s30), 1  ;;  %v2453_v2 = vld [vmem:[%s3111_s6] sm:$0x3]  ;;  %vm487_vm0 = vcmask 1042432   ;;  %vm438_vm1 = vcmask 23552   ;;  %v2237_v50 = vld [vmem:[%s3110_s5 + $0x38] sm:$0xff]  }
   0xd   : > { %s2448_s13 = sshll.u32 %s3120_s30, 2  ;;  %v398_v4 = vld [vmem:[%s3108_s3] sm:$0x7]  ;;  %2124 = vmatprep.subr.bf16.mxu0 %v2237_v50  ;;  %v2238_v53 = vld [vmem:[%s3110_s5 + $0x30] sm:$0xff]   ;;  %v2239_v58 = vld [vmem:[%s3110_s5 + $0x28] sm:$0xff]   ;;  %vm2376_vm2 = vmmov 0  }
   0xe   : > { %v2446_v1 = vshrl.u32 %v845_v0, 7  ;;  %s377_s20 = scalar_lea.vmem %s3105_s0, %s2448_s13  ;;  %s381_s23 = scalar_lea.vmem %s3106_s1, %s2448_s13  ;;  %2098 = vmatprep.subr.msk.mxu1 %vm487_vm0, %v398_v4  ;;  %v2510_v31 = vld [vmem:[%s3109_s4] ss:$0 sm:$0xff]  ;;  %2125 = vmatpush3.bf16.msra.mxu0 %v2237_v50 }
   0xf   : > { %s385_s26 = scalar_lea.vmem %s3107_s2, %s2448_s13  ;;  %v394_v6 = vld [vmem:[%s377_s20] sm:$0x7]  ;;  %2099 = vmatpush3.msk.msra.mxu1 %vm487_vm0, %v398_v4  ;;  %2126 = vmatprep.subr.bf16.mxu0 %v2238_v53  ;;  %s392_s16 = scalar_lea.vmem %s3114_s9, %s2448_s13 }
  0x10   : > { %v1300_v3 = vsub.s32 1, %v2446_v1  ;;  %v1754_v5 = vsub.s32 2, %v2446_v1  ;;  %v395_v7 = vld [vmem:[%s381_s23] sm:$0x7]  ;;  %406 = vxpose.xlu0.b32.start.end [1/1] (short) %v394_v6, 128 }
  0x11   : > { %v2475_v9 = vld [vmem:[%s385_s26] sm:$0x7]  ;;  %v2477_v10 = vadd.f32 1.0, %v395_v7  ;;  %v2242_v7 = vld [vmem:[%s3110_s5 + $0x10] sm:$0xff]  }
  0x12   : > { %v2473_v8 = vrot.slane %v2453_v2, %v1300_v3  ;;  %v2480_v11 = vrot.slane %v2475_v9, %v1300_v3  ;;  %v2483_v12 = vrot.slane %v2475_v9, %v1754_v5  ;;  %2127 = vmatpush3.bf16.msra.mxu0 %v2238_v53  ;;  %v2240_v60 = vld [vmem:[%s3110_s5 + $0x20] sm:$0xff]  }
  0x13   : > { %v2486_v13 = vrot.slane %v2477_v10, %v1300_v3  ;;  %v2489_v14 = vrot.slane %v2477_v10, %v1754_v5  ;;  %2128 = vmatprep.subr.bf16.mxu0 %v2239_v58  ;;  %v2241_v3 = vld [vmem:[%s3110_s5 + $0x18] sm:$0xff]  }
  0x16   : > { %2129 = vmatpush3.bf16.msra.mxu0 %v2239_v58 }
  0x17   : > { %2130 = vmatprep.subr.bf16.mxu0 %v2240_v60 }
  0x1a   : > { %2131 = vmatpush3.bf16.msra.mxu0 %v2240_v60 }
  0x1b   : > { %2132 = vmatprep.subr.bf16.mxu0 %v2241_v3 }
  0x1e   : > { %2133 = vmatpush3.bf16.msra.mxu0 %v2241_v3 }
  0x1f   : > { %2134 = vmatprep.subr.bf16.mxu0 %v2242_v7 }
  0x22   : > { %2135 = vmatpush3.bf16.msra.mxu0 %v2242_v7 }
  0x8c   : > { %v422_v15 = vpop.trf.xlu0 }
  0x8d   : > { %2100 = vmatprep.mubr.msk.f32.mxu1 %vm438_vm1, %v422_v15 }
  0x90   : > { %v423_v16 = vpop.trf.xlu0 }
  0x91   : > { %2101 = vmatmul.mubr.msk.f32.vlgmr.msra.gmra.mxu1 %vm438_vm1, %v423_v16 }
  0x94   : > { %v424_v17 = vpop.trf.xlu0 }
  0x95   : > { %2103 = vmatprep.mubr.msk.f32.mxu1 %vm438_vm1, %v424_v17 }
  0x98   : > { %v425_v18 = vpop.trf.xlu0 }
  0x99   : > { %2104 = vmatmul.mubr.msk.f32.gmra.mxu1 %vm438_vm1, %v425_v18 }
  0x9c   : > { %v426_v19 = vpop.trf.xlu0 }
  0x9d   : > { %2106 = vmatprep.mubr.msk.f32.mxu1 %vm438_vm1, %v426_v19  ;;  %v2243_v19 = vld [vmem:[%s3110_s5 + $0x8] sm:$0xff]  }
  0x9e   : > { %2136 = vmatprep.subr.bf16.mxu0 %v2243_v19 }
  0x9f   : > { %2137 = vmatpush3.bf16.msra.mxu0 %v2243_v19 }
  0xa0   : > { %v427_v20 = vpop.trf.xlu0 }
  0xa1   : > { %2107 = vmatmul.mubr.msk.f32.gmra.mxu1 %vm438_vm1, %v427_v20  ;;  %v2244_v20 = vld [vmem:[%s3110_s5] sm:$0xff]  }
  0xa2   : > { %2138 = vmatprep.subr.bf16.mxu0 %v2244_v20 }
  0xa3   : > { %2139 = vmatpush3.bf16.msra.mxu0 %v2244_v20 }
  0xa4   : > { %v428_v21 = vpop.trf.xlu0 }
  0xa5   : > { %2109 = vmatprep.mubr.msk.f32.mxu1 %vm438_vm1, %v428_v21 }
  0xa8   : > { %v429_v22 = vpop.trf.xlu0 }
  0xa9   : > { %2110 = vmatmul.mubr.msk.f32.gmra.mxu1 %vm438_vm1, %v429_v22 }
  0xac   : > { %v430_v23 = vpop.trf.xlu0 }
  0xad   : > { %2112 = vmatprep.mubr.msk.f32.mxu1 %vm438_vm1, %v430_v23 }
  0xb0   : > { %v431_v24 = vpop.trf.xlu0 }
  0xb1   : > { %2113 = vmatmul.mubr.msk.f32.gmra.mxu1 %vm438_vm1, %v431_v24 }
  0xb4   : > { %v432_v25 = vpop.trf.xlu0 }
  0xb5   : > { %2115 = vmatprep.mubr.msk.f32.mxu1 %vm438_vm1, %v432_v25 }
  0xb8   : > { %v433_v26 = vpop.trf.xlu0 }
  0xb9   : > { %2116 = vmatmul.mubr.msk.f32.gmra.mxu1 %vm438_vm1, %v433_v26 }
  0xbc   : > { %v434_v27 = vpop.trf.xlu0 }
  0xbd   : > { %2118 = vmatprep.mubr.msk.f32.mxu1 %vm438_vm1, %v434_v27 }
  0xc0   : > { %v435_v28 = vpop.trf.xlu0 }
  0xc1   : > { %2119 = vmatmul.mubr.msk.f32.gmra.mxu1 %vm438_vm1, %v435_v28 }
  0xc4   : > { %v436_v29 = vpop.trf.xlu0 }
  0xc5   : > { %2121 = vmatprep.mubr.msk.f32.mxu1 %vm438_vm1, %v436_v29 }
  0xc8   : > { %v437_v30 = vpop.trf.xlu0 }
  0xc9   : > { %2122 = vmatmul.mubr.msk.f32.gmra.mxu1 %vm438_vm1, %v437_v30 }
 0x151   : > { %v2102_v32 = vpop.f32.mrf.mxu1 }
 0x152   : > { %v2513_v33 = vadd.f32 %v2102_v32, %v2510_v31 }
 0x153   : > { %v557_v34 = vpop.f32.mrf.mxu1 }
 0x154   : > { %v2516_v35 = vadd.f32 %v2510_v31, %v557_v34  ;;  %638 = vadd.xlane.f32.xlu1 %v2513_v33  ;;  %v669_v36 = vmul.f32 %v2513_v33, %v2513_v33 }
 0x156   : > { %636 = vadd.xlane.f32.xlu0 %v2516_v35  ;;  %v668_v37 = vmul.f32 %v2516_v35, %v2516_v35 }
 0x158   : > { %686 = vadd.xlane.f32.xlu1 %v669_v36 }
 0x159   : > { %v2105_v38 = vpop.f32.mrf.mxu1 }
 0x15a   : > { %v2525_v39 = vadd.f32 %v2105_v38, %v2510_v31 }
 0x15b   : > { %v567_v40 = vpop.f32.mrf.mxu1 }
 0x15c   : > { %684 = vadd.xlane.f32.xlu1 %v668_v37  ;;  %v2529_v41 = vadd.f32 %v2510_v31, %v567_v40  ;;  %v671_v42 = vmul.f32 %v2525_v39, %v2525_v39 }
 0x15e   : > { %v670_v44 = vmul.f32 %v2529_v41, %v2529_v41 }
 0x160   : > { %642 = vadd.xlane.f32.xlu1 %v2525_v39 }
 0x161   : > { %v2108_v43 = vpop.f32.mrf.mxu1 }
 0x162   : > { %v2537_v45 = vadd.f32 %v2108_v43, %v2510_v31 }
 0x163   : > { %v577_v46 = vpop.f32.mrf.mxu1 }
 0x164   : > { %640 = vadd.xlane.f32.xlu1 %v2529_v41  ;;  %v2541_v48 = vadd.f32 %v2510_v31, %v577_v46  ;;  %v673_v52 = vmul.f32 %v2537_v45, %v2537_v45 }
 0x166   : > { %v672_v55 = vmul.f32 %v2541_v48, %v2541_v48 }
 0x168   : > { %690 = vadd.xlane.f32.xlu1 %v671_v42 }
 0x169   : > { %v2111_v47 = vpop.f32.mrf.mxu1 }
 0x16a   : > { %v2555_v57 = vadd.f32 %v2111_v47, %v2510_v31 }
 0x16b   : > { %v587_v49 = vpop.f32.mrf.mxu1 }
 0x16c   : > { %688 = vadd.xlane.f32.xlu1 %v670_v44  ;;  %v2565_v62 = vadd.f32 %v2510_v31, %v587_v49  ;;  %v675_v4 = vmul.f32 %v2555_v57, %v2555_v57 }
 0x16e   : > { %v674_v15 = vmul.f32 %v2565_v62, %v2565_v62 }
 0x170   : > { %646 = vadd.xlane.f32.xlu1 %v2537_v45 }
 0x171   : > { %v2114_v51 = vpop.f32.mrf.mxu1 }
 0x172   : > { %v2587_v17 = vadd.f32 %v2114_v51, %v2510_v31 }
 0x173   : > { %v597_v54 = vpop.f32.mrf.mxu1 }
 0x174   : > { %644 = vadd.xlane.f32.xlu1 %v2541_v48  ;;  %v2599_v21 = vadd.f32 %v2510_v31, %v597_v54  ;;  %v677_v22 = vmul.f32 %v2587_v17, %v2587_v17 }
 0x176   : > { %v676_v23 = vmul.f32 %v2599_v21, %v2599_v21 }
 0x178   : > { %694 = vadd.xlane.f32.xlu1 %v673_v52 }
 0x179   : > { %v2117_v56 = vpop.f32.mrf.mxu1 }
 0x17a   : > { %v2607_v24 = vadd.f32 %v2117_v56, %v2510_v31  ;;  %v2633_v56 = vsub.s32 0, %v2446_v1 }
 0x17b   : > { %v607_v59 = vpop.f32.mrf.mxu1 }
 0x17c   : > { %692 = vadd.xlane.f32.xlu1 %v672_v55  ;;  %v2611_v25 = vadd.f32 %v2510_v31, %v607_v59  ;;  %v679_v26 = vmul.f32 %v2607_v24, %v2607_v24 }
 0x17e   : > { %v678_v27 = vmul.f32 %v2611_v25, %v2611_v25 }
 0x180   : > { %650 = vadd.xlane.f32.xlu1 %v2555_v57 }
 0x181   : > { %v2120_v61 = vpop.f32.mrf.mxu1 }
 0x182   : > { %v2568_v63 = vadd.f32 %v2120_v61, %v2510_v31 }
 0x183   : > { %v617_v5 = vpop.f32.mrf.mxu1 }
 0x184   : > { %648 = vadd.xlane.f32.xlu1 %v2565_v62  ;;  %v681_v0 = vmul.f32 %v2568_v63, %v2568_v63  ;;  %v2620_v28 = vadd.f32 %v2510_v31, %v617_v5 }
 0x186   : > { %710 = vadd.xlane.f32.xlu0 %v681_v0  ;;  %v680_v29 = vmul.f32 %v2620_v28, %v2620_v28  ;;  %v2637_v0 = vrot.slane %v2477_v10, %v2633_v56 }
 0x188   : > { %698 = vadd.xlane.f32.xlu1 %v675_v4 }
 0x189   : > { %v2123_v6 = vpop.f32.mrf.mxu1 }
 0x18a   : > { %v2584_v16 = vadd.f32 %v2123_v6, %v2510_v31  ;;  %v2642_v6 = vrot.slane %v2475_v9, %v2633_v56 }
 0x18b   : > { %v627_v30 = vpop.f32.mrf.mxu1 }
 0x18c   : > { %696 = vadd.xlane.f32.xlu1 %v674_v15  ;;  %v683_v18 = vmul.f32 %v2584_v16, %v2584_v16  ;;  %v2627_v32 = vadd.f32 %v2510_v31, %v627_v30 }
 0x18e   : > { %714 = vadd.xlane.f32.xlu0 %v683_v18  ;;  %v682_v34 = vmul.f32 %v2627_v32, %v2627_v32 }
 0x190   : > { %654 = vadd.xlane.f32.xlu1 %v2587_v17 }
 0x194   : > { %652 = vadd.xlane.f32.xlu1 %v2599_v21 }
 0x198   : > { %702 = vadd.xlane.f32.xlu1 %v677_v22 }
 0x19c   : > { %700 = vadd.xlane.f32.xlu1 %v676_v23 }
 0x1a0   : > { %658 = vadd.xlane.f32.xlu1 %v2607_v24 }
 0x1a4   : > { %656 = vadd.xlane.f32.xlu1 %v2611_v25 }
 0x1a8   : > { %706 = vadd.xlane.f32.xlu1 %v679_v26 }
 0x1ac   : > { %704 = vadd.xlane.f32.xlu1 %v678_v27 }
 0x1b0   : > { %662 = vadd.xlane.f32.xlu1 %v2568_v63 }
 0x1b4   : > { %660 = vadd.xlane.f32.xlu1 %v2620_v28 }
 0x1b8   : > { %708 = vadd.xlane.f32.xlu1 %v680_v29 }
 0x1bc   : > { %666 = vadd.xlane.f32.xlu1 %v2584_v16 }
 0x1c0   : > { %664 = vadd.xlane.f32.xlu1 %v2627_v32 }
 0x1c4   : > { %712 = vadd.xlane.f32.xlu1 %v682_v34 }
 0x1dd   : > { %v639_v36 = vpop.xlane.xlu1 %638 }
 0x1de   : > { %v717_v37 = vmul.f32 0.03125, %v639_v36 }
 0x1df   : > { %v637_v38 = vpop.xlane.xlu0 %636 }
 0x1e0   : > { %v749_v42 = vmul.f32 %v717_v37, %v717_v37  ;;  %v716_v43 = vmul.f32 0.03125, %v637_v38  ;;  %v781_v3 = vsub.f32 %v2513_v33, %v717_v37 }
 0x1e1   : > { %v687_v40 = vpop.xlane.xlu1 %686 }
 0x1e2   : > { %v733_v44 = vmul.f32 0.03125, %v687_v40  ;;  %v748_v49 = vmul.f32 %v716_v43, %v716_v43  ;;  %v780_v20 = vsub.f32 %v2516_v35, %v716_v43 }
 0x1e4   : > { %v765_v46 = vsub.f32 %v733_v44, %v749_v42 }
 0x1e5   : > { %v685_v47 = vpop.xlane.xlu1 %684 }
 0x1e6   : > { %v797_v50 = vadd.f32 1e-05, %v765_v46  ;;  %v732_v51 = vmul.f32 0.03125, %v685_v47 }
 0x1e8   : > { %2253 = vrsqrt.f32 %v797_v50  ;;  %v764_v31 = vsub.f32 %v732_v51, %v748_v49 }
 0x1e9   : > { %v643_v52 = vpop.xlane.xlu1 %642 }
 0x1ea   : > { %v796_v53 = vadd.f32 1e-05, %v764_v31  ;;  %v719_v55 = vmul.f32 0.03125, %v643_v52 }
 0x1ec   : > { %2255 = vrsqrt.f32 %v796_v53  ;;  %v751_v59 = vmul.f32 %v719_v55, %v719_v55  ;;  %v783_v47 = vsub.f32 %v2525_v39, %v719_v55 }
 0x1ed   : > { %v641_v54 = vpop.xlane.xlu1 %640 }
 0x1ee   : > { %v718_v60 = vmul.f32 0.03125, %v641_v54 }
 0x1f0   : > { %v750_v15 = vmul.f32 %v718_v60, %v718_v60 }
 0x1f1   : > { %v691_v58 = vpop.xlane.xlu1 %690 }
 0x1f2   : > { %v735_v61 = vmul.f32 0.03125, %v691_v58 }
 0x1f4   : > { %v767_v4 = vsub.f32 %v735_v61, %v751_v59  ;;  %v782_v59 = vsub.f32 %v2529_v41, %v718_v60 }
 0x1f5   : > { %v2254_v5 = vpop.eup %2253  ;;  %v689_v7 = vpop.xlane.xlu1 %688 }
 0x1f6   : > { %v799_v1 = vadd.f32 1e-05, %v767_v4  ;;  %v734_v18 = vmul.f32 0.03125, %v689_v7  ;;  %v829_v19 = vmul.f32 %v2254_v5, %v781_v3 }
 0x1f8   : > { %2257 = vrsqrt.f32 %v799_v1  ;;  %v766_v22 = vsub.f32 %v734_v18, %v750_v15  ;;  %v850_v10 = vmul.f32 %v2637_v0, %v829_v19 }
 0x1f9   : > { %v2256_v23 = vpop.eup %2255  ;;  %v647_v26 = vpop.xlane.xlu1 %646 }
 0x1fa   : > { %v798_v33 = vadd.f32 1e-05, %v766_v22  ;;  %v828_v27 = vmul.f32 %v2256_v23, %v780_v20  ;;  %v870_v29 = vadd.f32 %v2642_v6, %v850_v10  ;;  %v721_v30 = vmul.f32 0.03125, %v647_v26 }
 0x1fc   : > { %2259 = vrsqrt.f32 %v798_v33  ;;  %v849_v9 = vmul.f32 %v2637_v0, %v828_v27  ;;  %v886_v37 = vmul.f32 0.2, %v870_v29  ;;  %v753_v35 = vmul.f32 %v721_v30, %v721_v30 }
 0x1fd   : > { %v645_v34 = vpop.xlane.xlu1 %644  ;;  %v785_v27 = vsub.f32 %v2537_v45, %v721_v30 }
 0x1fe   : > { %v869_v36 = vadd.f32 %v2642_v6, %v849_v9  ;;  %v720_v42 = vmul.f32 0.03125, %v645_v34  ;;  %v902_v46 = vmax.f32 %v870_v29, %v886_v37 }
 0x200   : > { %v885_v38 = vmul.f32 0.2, %v869_v36  ;;  %v752_v52 = vmul.f32 %v720_v42, %v720_v42 }
 0x201   : > { %v695_v40 = vpop.xlane.xlu1 %694 }
 0x202   : > { %v737_v43 = vmul.f32 0.03125, %v695_v40  ;;  %v901_v44 = vmax.f32 %v869_v36, %v885_v38 }
 0x204   : > { %v769_v49 = vsub.f32 %v737_v43, %v753_v35  ;;  %v917_v50 = vpack.c.bf16 %v902_v46, %v901_v44  ;;  %v784_v43 = vsub.f32 %v2541_v48, %v720_v42 }
 0x205   : > { %v2258_v51 = vpop.eup %2257  ;;  %v693_v31 = vpop.xlane.xlu1 %692 }
 0x206   : > { %v801_v53 = vadd.f32 1e-05, %v769_v49  ;;  %v736_v54 = vmul.f32 0.03125, %v693_v31  ;;  %2140 = vmatprep.mubr.bf16.mxu0 %v917_v50  ;;  %v831_v58 = vmul.f32 %v2258_v51, %v783_v47 }
 0x208   : > { %2261 = vrsqrt.f32 %v801_v53  ;;  %v768_v61 = vsub.f32 %v736_v54, %v752_v52  ;;  %v852_v3 = vmul.f32 %v2637_v0, %v831_v58 }
 0x209   : > { %v2260_v4 = vpop.eup %2259  ;;  %v651_v5 = vpop.xlane.xlu1 %650 }
 0x20a   : > { %v800_v7 = vadd.f32 1e-05, %v768_v61  ;;  %v830_v15 = vmul.f32 %v2260_v4, %v782_v59  ;;  %v872_v39 = vadd.f32 %v2642_v6, %v852_v3  ;;  %v723_v1 = vmul.f32 0.03125, %v651_v5 }
 0x20c   : > { %2263 = vrsqrt.f32 %v800_v7  ;;  %v851_v55 = vmul.f32 %v2637_v0, %v830_v15  ;;  %v888_v20 = vmul.f32 0.2, %v872_v39  ;;  %v755_v41 = vmul.f32 %v723_v1, %v723_v1 }
 0x20d   : > { %v649_v18 = vpop.xlane.xlu1 %648  ;;  %v787_v5 = vsub.f32 %v2555_v57, %v723_v1 }
 0x20e   : > { %v871_v19 = vadd.f32 %v2642_v6, %v851_v55  ;;  %v722_v10 = vmul.f32 0.03125, %v649_v18  ;;  %v904_v33 = vmax.f32 %v872_v39, %v888_v20 }
 0x210   : > { %v887_v22 = vmul.f32 0.2, %v871_v19  ;;  %v754_v37 = vmul.f32 %v722_v10, %v722_v10 }
 0x211   : > { %v699_v60 = vpop.xlane.xlu1 %698 }
 0x212   : > { %v739_v23 = vmul.f32 0.03125, %v699_v60  ;;  %v903_v26 = vmax.f32 %v871_v19, %v887_v22 }
 0x214   : > { %v771_v29 = vsub.f32 %v739_v23, %v755_v41  ;;  %v918_v9 = vpack.c.bf16 %v904_v33, %v903_v26  ;;  %v786_v41 = vsub.f32 %v2565_v62, %v722_v10 }
 0x215   : > { %v2262_v34 = vpop.eup %2261  ;;  %v697_v36 = vpop.xlane.xlu1 %696 }
 0x216   : > { %v803_v38 = vadd.f32 1e-05, %v771_v29  ;;  %v738_v35 = vmul.f32 0.03125, %v697_v36  ;;  %2141 = vmatmul.mubr.bf16.vlgmr.msra.gmra.mxu0 %v918_v9  ;;  %v833_v40 = vmul.f32 %v2262_v34, %v785_v27 }
 0x218   : > { %2265 = vrsqrt.f32 %v803_v38  ;;  %v770_v44 = vsub.f32 %v738_v35, %v754_v37  ;;  %v854_v46 = vmul.f32 %v2637_v0, %v833_v40 }
 0x219   : > { %v2264_v47 = vpop.eup %2263  ;;  %v655_v49 = vpop.xlane.xlu1 %654 }
 0x21a   : > { %v802_v50 = vadd.f32 1e-05, %v770_v44  ;;  %v832_v51 = vmul.f32 %v2264_v47, %v784_v43  ;;  %v874_v45 = vadd.f32 %v2642_v6, %v854_v46  ;;  %v725_v31 = vmul.f32 0.03125, %v655_v49 }
 0x21c   : > { %2267 = vrsqrt.f32 %v802_v50  ;;  %v853_v30 = vmul.f32 %v2637_v0, %v832_v51  ;;  %v890_v54 = vmul.f32 0.2, %v874_v45  ;;  %v757_v48 = vmul.f32 %v725_v31, %v725_v31 }
 0x21d   : > { %v653_v52 = vpop.xlane.xlu1 %652  ;;  %v789_v46 = vsub.f32 %v2587_v17, %v725_v31 }
 0x21e   : > { %v873_v53 = vadd.f32 %v2642_v6, %v853_v30  ;;  %v724_v59 = vmul.f32 0.03125, %v653_v52  ;;  %v906_v4 = vmax.f32 %v874_v45, %v890_v54 }
 0x220   : > { %v889_v58 = vmul.f32 0.2, %v873_v53  ;;  %v756_v18 = vmul.f32 %v724_v59, %v724_v59 }
 0x221   : > { %v703_v42 = vpop.xlane.xlu1 %702 }
 0x222   : > { %v741_v61 = vmul.f32 0.03125, %v703_v42  ;;  %v905_v3 = vmax.f32 %v873_v53, %v889_v58  ;;  %v711_v53 = vpop.xlane.xlu0 %710  ;;  %v788_v58 = vsub.f32 %v2599_v21, %v724_v59 }
 0x224   : > { %v773_v7 = vsub.f32 %v741_v61, %v757_v48  ;;  %v919_v15 = vpack.c.bf16 %v906_v4, %v905_v3  ;;  %v745_v4 = vmul.f32 0.03125, %v711_v53 }
 0x225   : > { %v2266_v39 = vpop.eup %2265  ;;  %v701_v55 = vpop.xlane.xlu1 %700 }
 0x226   : > { %v805_v19 = vadd.f32 1e-05, %v773_v7  ;;  %v740_v20 = vmul.f32 0.03125, %v701_v55  ;;  %2144 = vmatprep.mubr.bf16.mxu0 %v919_v15  ;;  %v835_v22 = vmul.f32 %v2266_v39, %v787_v5 }
 0x228   : > { %2269 = vrsqrt.f32 %v805_v19  ;;  %v772_v60 = vsub.f32 %v740_v20, %v756_v18  ;;  %v856_v23 = vmul.f32 %v2637_v0, %v835_v22 }
 0x229   : > { %v2268_v26 = vpop.eup %2267  ;;  %v659_v33 = vpop.xlane.xlu1 %658 }
 0x22a   : > { %v804_v27 = vadd.f32 1e-05, %v772_v60  ;;  %v834_v29 = vmul.f32 %v2268_v26, %v786_v41  ;;  %v876_v57 = vadd.f32 %v2642_v6, %v856_v23  ;;  %v727_v9 = vmul.f32 0.03125, %v659_v33 }
 0x22c   : > { %2271 = vrsqrt.f32 %v804_v27  ;;  %v855_v1 = vmul.f32 %v2637_v0, %v834_v29  ;;  %v892_v37 = vmul.f32 0.2, %v876_v57  ;;  %v759_v62 = vmul.f32 %v727_v9, %v727_v9  ;;  %v715_v27 = vpop.xlane.xlu0 %714 }
 0x22d   : > { %v657_v34 = vpop.xlane.xlu1 %656  ;;  %v791_v29 = vsub.f32 %v2607_v24, %v727_v9 }
 0x22e   : > { %v875_v36 = vadd.f32 %v2642_v6, %v855_v1  ;;  %v726_v35 = vmul.f32 0.03125, %v657_v34  ;;  %v908_v44 = vmax.f32 %v876_v57, %v892_v37 }
 0x230   : > { %v891_v38 = vmul.f32 0.2, %v875_v36  ;;  %v758_v45 = vmul.f32 %v726_v35, %v726_v35 }
 0x231   : > { %v707_v10 = vpop.xlane.xlu1 %706 }
 0x232   : > { %v743_v40 = vmul.f32 0.03125, %v707_v10  ;;  %v907_v43 = vmax.f32 %v875_v36, %v891_v38 }
 0x234   : > { %v775_v47 = vsub.f32 %v743_v40, %v759_v62  ;;  %v920_v49 = vpack.c.bf16 %v908_v44, %v907_v43  ;;  %v747_v62 = vmul.f32 0.03125, %v715_v27  ;;  %v790_v40 = vsub.f32 %v2611_v25, %v726_v35 }
 0x235   : > { %v2270_v50 = vpop.eup %2269  ;;  %v705_v51 = vpop.xlane.xlu1 %704 }
 0x236   : > { %v807_v30 = vadd.f32 1e-05, %v775_v47  ;;  %v742_v52 = vmul.f32 0.03125, %v705_v51  ;;  %2145 = vmatmul.mubr.bf16.gmra.mxu0 %v920_v49  ;;  %v837_v54 = vmul.f32 %v2270_v50, %v789_v46 }
 0x238   : > { %2273 = vrsqrt.f32 %v807_v30  ;;  %v774_v48 = vsub.f32 %v742_v52, %v758_v45  ;;  %v858_v42 = vmul.f32 %v2637_v0, %v837_v54 }
 0x239   : > { %v2272_v61 = vpop.eup %2271  ;;  %v663_v3 = vpop.xlane.xlu1 %662 }
 0x23a   : > { %v806_v17 = vadd.f32 1e-05, %v774_v48  ;;  %v729_v31 = vmul.f32 0.03125, %v663_v3  ;;  %v836_v5 = vmul.f32 %v2272_v61, %v788_v58  ;;  %v878_v7 = vadd.f32 %v2642_v6, %v858_v42 }
 0x23c   : > { %2275 = vrsqrt.f32 %v806_v17  ;;  %v761_v15 = vmul.f32 %v729_v31, %v729_v31  ;;  %v857_v39 = vmul.f32 %v2637_v0, %v836_v5  ;;  %v894_v18 = vmul.f32 0.2, %v878_v7 }
 0x23d   : > { %v661_v55 = vpop.xlane.xlu1 %660  ;;  %v793_v30 = vsub.f32 %v2568_v63, %v729_v31 }
 0x23e   : > { %v777_v19 = vsub.f32 %v745_v4, %v761_v15  ;;  %v728_v21 = vmul.f32 0.03125, %v661_v55  ;;  %v877_v59 = vadd.f32 %v2642_v6, %v857_v39  ;;  %v910_v60 = vmax.f32 %v878_v7, %v894_v18 }
 0x240   : > { %v809_v20 = vadd.f32 1e-05, %v777_v19  ;;  %v893_v22 = vmul.f32 0.2, %v877_v59  ;;  %v760_v23 = vmul.f32 %v728_v21, %v728_v21  ;;  %v792_v7 = vsub.f32 %v2620_v28, %v728_v21 }
 0x241   : > { %v709_v41 = vpop.xlane.xlu1 %708 }
 0x242   : > { %2277 = vrsqrt.f32 %v809_v20  ;;  %v744_v26 = vmul.f32 0.03125, %v709_v41  ;;  %v909_v33 = vmax.f32 %v877_v59, %v893_v22 }
 0x244   : > { %v776_v57 = vsub.f32 %v744_v26, %v760_v23  ;;  %v921_v1 = vpack.c.bf16 %v910_v60, %v909_v33 }
 0x245   : > { %v2274_v34 = vpop.eup %2273  ;;  %v667_v36 = vpop.xlane.xlu1 %666 }
 0x246   : > { %v808_v37 = vadd.f32 1e-05, %v776_v57  ;;  %v731_v38 = vmul.f32 0.03125, %v667_v36  ;;  %2148 = vmatprep.mubr.bf16.mxu0 %v921_v1  ;;  %v839_v10 = vmul.f32 %v2274_v34, %v791_v29 }
 0x248   : > { %2279 = vrsqrt.f32 %v808_v37  ;;  %v763_v43 = vmul.f32 %v731_v38, %v731_v38  ;;  %v860_v44 = vmul.f32 %v2637_v0, %v839_v10  ;;  %v795_v18 = vsub.f32 %v2584_v16, %v731_v38 }
 0x249   : > { %v2276_v46 = vpop.eup %2275  ;;  %v665_v47 = vpop.xlane.xlu1 %664 }
 0x24a   : > { %v779_v49 = vsub.f32 %v747_v62, %v763_v43  ;;  %v730_v50 = vmul.f32 0.03125, %v665_v47  ;;  %v838_v24 = vmul.f32 %v2276_v46, %v790_v40  ;;  %v880_v9 = vadd.f32 %v2642_v6, %v860_v44 }
 0x24b   : > { %v2693_v62 = vrot.slane %v2453_v2, %v2633_v56 }
 0x24c   : > { %v811_v51 = vadd.f32 1e-05, %v779_v49  ;;  %v859_v45 = vmul.f32 %v2637_v0, %v838_v24  ;;  %v762_v52 = vmul.f32 %v730_v50, %v730_v50  ;;  %v896_v54 = vmul.f32 0.2, %v880_v9 }
 0x24d   : > { %v713_v53 = vpop.xlane.xlu1 %712  ;;  %v794_v21 = vsub.f32 %v2627_v32, %v730_v50  ;;  %v2245_v50 = vld [vmem:[%s3110_s5 + $0x78] sm:$0xff]  }
 0x24e   : > { %2281 = vrsqrt.f32 %v811_v51  ;;  %v746_v25 = vmul.f32 0.03125, %v713_v53  ;;  %v879_v35 = vadd.f32 %v2642_v6, %v859_v45  ;;  %v912_v17 = vmax.f32 %v880_v9, %v896_v54  ;;  %2156 = vmatprep.subr.bf16.mxu0 %v2245_v50  ;;  %v2246_v51 = vld [vmem:[%s3110_s5 + $0x70] sm:$0xff]  }
 0x24f   : > { %v2278_v58 = vpop.eup %2277  ;;  %2157 = vmatpush3.bf16.msra.mxu0 %v2245_v50 }
 0x250   : > { %v778_v48 = vsub.f32 %v746_v25, %v762_v52  ;;  %v895_v42 = vmul.f32 0.2, %v879_v35  ;;  %v841_v61 = vmul.f32 %v2278_v58, %v793_v30  ;;  %2158 = vmatprep.subr.bf16.mxu0 %v2246_v51  ;;  %v2247_v25 = vld [vmem:[%s3110_s5 + $0x68] sm:$0xff]  }
 0x252   : > { %v810_v3 = vadd.f32 1e-05, %v778_v48  ;;  %v911_v4 = vmax.f32 %v879_v35, %v895_v42  ;;  %v862_v5 = vmul.f32 %v2637_v0, %v841_v61  ;;  %v2248_v48 = vld [vmem:[%s3110_s5 + $0x60] sm:$0xff]  }
 0x253   : > { %2159 = vmatpush3.bf16.msra.mxu0 %v2246_v51 }
 0x254   : > { %2283 = vrsqrt.f32 %v810_v3  ;;  %v922_v63 = vpack.c.bf16 %v912_v17, %v911_v4  ;;  %v882_v39 = vadd.f32 %v2642_v6, %v862_v5  ;;  %2160 = vmatprep.subr.bf16.mxu0 %v2247_v25  ;;  %v2249_v3 = vld [vmem:[%s3110_s5 + $0x58] sm:$0xff]   ;;  %v2250_v17 = vld [vmem:[%s3110_s5 + $0x50] sm:$0xff]   ;;  %v2251_v5 = vld [vmem:[%s3110_s5 + $0x48] sm:$0xff]  }
 0x255   : > { %v2280_v31 = vpop.eup %2279 }
 0x256   : > { %2149 = vmatmul.mubr.bf16.gmra.mxu0 %v922_v63  ;;  %v840_v15 = vmul.f32 %v2280_v31, %v792_v7  ;;  %v898_v59 = vmul.f32 0.2, %v882_v39  ;;  %v2252_v7 = vld [vmem:[%s3110_s5 + $0x40] sm:$0xff]  }
 0x257   : > { %2161 = vmatpush3.bf16.msra.mxu0 %v2247_v25 }
 0x258   : > { %v861_v55 = vmul.f32 %v2637_v0, %v840_v15  ;;  %v914_v23 = vmax.f32 %v882_v39, %v898_v59  ;;  %2162 = vmatprep.subr.bf16.mxu0 %v2248_v48 }
 0x25a   : > { %v881_v19 = vadd.f32 %v2642_v6, %v861_v55 }
 0x25b   : > { %v2282_v20 = vpop.eup %2281  ;;  %2163 = vmatpush3.bf16.msra.mxu0 %v2248_v48 }
 0x25c   : > { %v897_v22 = vmul.f32 0.2, %v881_v19  ;;  %v843_v41 = vmul.f32 %v2282_v20, %v795_v18  ;;  %2164 = vmatprep.subr.bf16.mxu0 %v2249_v3 }
 0x25e   : > { %v913_v60 = vmax.f32 %v881_v19, %v897_v22  ;;  %v864_v28 = vmul.f32 %v2637_v0, %v843_v41 }
 0x25f   : > { %2165 = vmatpush3.bf16.msra.mxu0 %v2249_v3 }
 0x260   : > { %v923_v26 = vpack.c.bf16 %v914_v23, %v913_v60  ;;  %v884_v29 = vadd.f32 %v2642_v6, %v864_v28  ;;  %2166 = vmatprep.subr.bf16.mxu0 %v2250_v17 }
 0x261   : > { %v2284_v33 = vpop.eup %2283 }
 0x262   : > { %2152 = vmatprep.mubr.bf16.mxu0 %v923_v26  ;;  %v842_v27 = vmul.f32 %v2284_v33, %v794_v21  ;;  %v900_v1 = vmul.f32 0.2, %v884_v29 }
 0x263   : > { %2167 = vmatpush3.bf16.msra.mxu0 %v2250_v17 }
 0x264   : > { %v863_v16 = vmul.f32 %v2637_v0, %v842_v27  ;;  %v916_v37 = vmax.f32 %v884_v29, %v900_v1  ;;  %2168 = vmatprep.subr.bf16.mxu0 %v2251_v5 }
 0x266   : > { %v883_v57 = vadd.f32 %v2642_v6, %v863_v16 }
 0x267   : > { %2169 = vmatpush3.bf16.msra.mxu0 %v2251_v5 }
 0x268   : > { %v899_v34 = vmul.f32 0.2, %v883_v57  ;;  %2170 = vmatprep.subr.bf16.mxu0 %v2252_v7 }
 0x26a   : > { %v915_v36 = vmax.f32 %v883_v57, %v899_v34 }
 0x26b   : > { %2171 = vmatpush3.bf16.msra.mxu0 %v2252_v7 }
 0x26c   : > { %v924_v38 = vpack.c.bf16 %v916_v37, %v915_v36 }
 0x26e   : > { %2153 = vmatmul.mubr.bf16.gmra.mxu0 %v924_v38 }
 0x2d6   : > { %v2142_v32 = vpop.f32.mrf.mxu0 }
 0x2d7   : > { %v2696_v10 = vadd.f32 %v2142_v32, %v2693_v62 }
 0x2d8   : > { %v1027_v40 = vpop.f32.mrf.mxu0 }
 0x2d9   : > { %1094 = vadd.xlane.f32.xlu1 %v2696_v10  ;;  %v2700_v6 = vadd.f32 %v1027_v40, %v2693_v62  ;;  %v1124_v56 = vmul.f32 %v2696_v10, %v2696_v10 }
 0x2da   : > { %v2143_v0 = vpop.f32.mrf.mxu0 }
 0x2db   : > { %v2703_v43 = vadd.f32 %v2143_v0, %v2693_v62  ;;  %v1122_v47 = vmul.f32 %v2700_v6, %v2700_v6 }
 0x2dc   : > { %v1030_v44 = vpop.f32.mrf.mxu0 }
 0x2dd   : > { %1096 = vadd.xlane.f32.xlu0 %v2703_v43  ;;  %1090 = vadd.xlane.f32.xlu1 %v2700_v6  ;;  %v2708_v2 = vadd.f32 %v1030_v44, %v2693_v62  ;;  %v1125_v46 = vmul.f32 %v2703_v43, %v2703_v43 }
 0x2df   : > { %v1123_v49 = vmul.f32 %v2708_v2, %v2708_v2 }
 0x2e1   : > { %1092 = vadd.xlane.f32.xlu0 %v2708_v2  ;;  %1142 = vadd.xlane.f32.xlu1 %v1124_v56 }
 0x2e5   : > { %1144 = vadd.xlane.f32.xlu0 %v1125_v46  ;;  %1138 = vadd.xlane.f32.xlu1 %v1122_v47 }
 0x2e9   : > { %1140 = vadd.xlane.f32.xlu0 %v1123_v49 }
 0x2f6   : > { %v2146_v24 = vpop.f32.mrf.mxu0 }
 0x2f7   : > { %v2723_v9 = vadd.f32 %v2146_v24, %v2693_v62 }
 0x2f8   : > { %v1043_v45 = vpop.f32.mrf.mxu0 }
 0x2f9   : > { %1102 = vadd.xlane.f32.xlu1 %v2723_v9  ;;  %v2730_v52 = vadd.f32 %v1043_v45, %v2693_v62  ;;  %v1128_v58 = vmul.f32 %v2723_v9, %v2723_v9 }
 0x2fa   : > { %v2147_v30 = vpop.f32.mrf.mxu0 }
 0x2fb   : > { %v2733_v53 = vadd.f32 %v2147_v30, %v2693_v62  ;;  %v1126_v61 = vmul.f32 %v2730_v52, %v2730_v52 }
 0x2fc   : > { %v1046_v35 = vpop.f32.mrf.mxu0 }
 0x2fd   : > { %1104 = vadd.xlane.f32.xlu0 %v2733_v53  ;;  %1098 = vadd.xlane.f32.xlu1 %v2730_v52  ;;  %v2741_v54 = vadd.f32 %v1046_v35, %v2693_v62  ;;  %v1129_v42 = vmul.f32 %v2733_v53, %v2733_v53 }
 0x2ff   : > { %v1127_v4 = vmul.f32 %v2741_v54, %v2741_v54 }
 0x301   : > { %1100 = vadd.xlane.f32.xlu0 %v2741_v54  ;;  %1150 = vadd.xlane.f32.xlu1 %v1128_v58 }
 0x305   : > { %1152 = vadd.xlane.f32.xlu0 %v1129_v42  ;;  %1146 = vadd.xlane.f32.xlu1 %v1126_v61 }
 0x309   : > { %1148 = vadd.xlane.f32.xlu0 %v1127_v4 }
 0x316   : > { %v2150_v63 = vpop.f32.mrf.mxu0 }
 0x317   : > { %v2768_v31 = vadd.f32 %v2150_v63, %v2693_v62 }
 0x318   : > { %v1059_v15 = vpop.f32.mrf.mxu0 }
 0x319   : > { %1110 = vadd.xlane.f32.xlu1 %v2768_v31  ;;  %v2772_v55 = vadd.f32 %v1059_v15, %v2693_v62  ;;  %v1132_v20 = vmul.f32 %v2768_v31, %v2768_v31 }
 0x31a   : > { %v2151_v39 = vpop.f32.mrf.mxu0 }
 0x31b   : > { %v2775_v18 = vadd.f32 %v2151_v39, %v2693_v62  ;;  %v1130_v41 = vmul.f32 %v2772_v55, %v2772_v55 }
 0x31c   : > { %v1062_v19 = vpop.f32.mrf.mxu0 }
 0x31d   : > { %1112 = vadd.xlane.f32.xlu0 %v2775_v18  ;;  %1106 = vadd.xlane.f32.xlu1 %v2772_v55  ;;  %v2780_v59 = vadd.f32 %v1062_v19, %v2693_v62  ;;  %v1133_v22 = vmul.f32 %v2775_v18, %v2775_v18 }
 0x31f   : > { %v1131_v60 = vmul.f32 %v2780_v59, %v2780_v59 }
 0x321   : > { %1108 = vadd.xlane.f32.xlu0 %v2780_v59  ;;  %1158 = vadd.xlane.f32.xlu1 %v1132_v20 }
 0x325   : > { %1160 = vadd.xlane.f32.xlu0 %v1133_v22  ;;  %1154 = vadd.xlane.f32.xlu1 %v1130_v41 }
 0x329   : > { %1156 = vadd.xlane.f32.xlu0 %v1131_v60 }
 0x32e   : > { %v2154_v23 = vpop.f32.mrf.mxu0 }
 0x32f   : > { %v2792_v28 = vadd.f32 %v2154_v23, %v2693_v62 }
 0x330   : > { %v1075_v21 = vpop.f32.mrf.mxu0 }
 0x331   : > { %1118 = vadd.xlane.f32.xlu1 %v2792_v28  ;;  %v2796_v33 = vadd.f32 %v1075_v21, %v2693_v62  ;;  %v1136_v34 = vmul.f32 %v2792_v28, %v2792_v28 }
 0x332   : > { %v2155_v26 = vpop.f32.mrf.mxu0 }
 0x333   : > { %v2799_v27 = vadd.f32 %v2155_v26, %v2693_v62  ;;  %v1134_v57 = vmul.f32 %v2796_v33, %v2796_v33 }
 0x334   : > { %v1078_v29 = vpop.f32.mrf.mxu0 }
 0x335   : > { %1120 = vadd.xlane.f32.xlu0 %v2799_v27  ;;  %1114 = vadd.xlane.f32.xlu1 %v2796_v33  ;;  %v2804_v16 = vadd.f32 %v1078_v29, %v2693_v62  ;;  %v1137_v36 = vmul.f32 %v2799_v27, %v2799_v27 }
 0x337   : > { %v1135_v1 = vmul.f32 %v2804_v16, %v2804_v16 }
 0x339   : > { %1116 = vadd.xlane.f32.xlu0 %v2804_v16  ;;  %1162 = vadd.xlane.f32.xlu1 %v1134_v57 }
 0x33d   : > { %1164 = vadd.xlane.f32.xlu0 %v1135_v1  ;;  %1166 = vadd.xlane.f32.xlu1 %v1136_v34 }
 0x341   : > { %1168 = vadd.xlane.f32.xlu0 %v1137_v36 }
 0x362   : > { %v1095_v37 = vpop.xlane.xlu1 %1094 }
 0x363   : > { %v1172_v32 = vmul.f32 0.03125, %v1095_v37 }
 0x365   : > { %v1204_v46 = vmul.f32 %v1172_v32, %v1172_v32  ;;  %v1236_v39 = vsub.f32 %v2696_v10, %v1172_v32 }
 0x366   : > { %v1091_v38 = vpop.xlane.xlu1 %1090  ;;  %v1097_v62 = vpop.xlane.xlu0 %1096 }
 0x367   : > { %v1170_v40 = vmul.f32 0.03125, %v1091_v38  ;;  %v1173_v0 = vmul.f32 0.03125, %v1097_v62 }
 0x369   : > { %v1202_v50 = vmul.f32 %v1170_v40, %v1170_v40  ;;  %v1205_v24 = vmul.f32 %v1173_v0, %v1173_v0  ;;  %v1234_v19 = vsub.f32 %v2700_v6, %v1170_v40  ;;  %v1237_v41 = vsub.f32 %v2703_v43, %v1173_v0 }
 0x36a   : > { %v1143_v44 = vpop.xlane.xlu1 %1142  ;;  %v1093_v56 = vpop.xlane.xlu0 %1092 }
 0x36b   : > { %v1188_v47 = vmul.f32 0.03125, %v1143_v44  ;;  %v1171_v25 = vmul.f32 0.03125, %v1093_v56 }
 0x36d   : > { %v1220_v49 = vsub.f32 %v1188_v47, %v1204_v46  ;;  %v1203_v3 = vmul.f32 %v1171_v25, %v1171_v25  ;;  %v1235_v29 = vsub.f32 %v2708_v2, %v1171_v25 }
 0x36e   : > { %v1139_v51 = vpop.xlane.xlu1 %1138  ;;  %v1145_v45 = vpop.xlane.xlu0 %1144 }
 0x36f   : > { %v1252_v30 = vadd.f32 1e-05, %v1220_v49  ;;  %v1186_v35 = vmul.f32 0.03125, %v1139_v51  ;;  %v1189_v58 = vmul.f32 0.03125, %v1145_v45 }
 0x371   : > { %2285 = vrsqrt.f32 %v1252_v30  ;;  %v1218_v48 = vsub.f32 %v1186_v35, %v1202_v50  ;;  %v1221_v42 = vsub.f32 %v1189_v58, %v1205_v24 }
 0x372   : > { %v1141_v61 = vpop.xlane.xlu0 %1140 }
 0x373   : > { %v1250_v4 = vadd.f32 1e-05, %v1218_v48  ;;  %v1253_v17 = vadd.f32 1e-05, %v1221_v42  ;;  %v1187_v5 = vmul.f32 0.03125, %v1141_v61 }
 0x375   : > { %2287 = vrsqrt.f32 %v1250_v4  ;;  %v1219_v7 = vsub.f32 %v1187_v5, %v1203_v3 }
 0x376   : > { %2289 = vrsqrt.f32 %v1253_v17 }
 0x377   : > { %v1251_v63 = vadd.f32 1e-05, %v1219_v7 }
 0x379   : > { %2291 = vrsqrt.f32 %v1251_v63 }
 0x37e   : > { %v2286_v15 = vpop.eup %2285 }
 0x37f   : > { %v1284_v20 = vmul.f32 %v2286_v15, %v1236_v39 }
 0x381   : > { %v1304_v1 = vmul.f32 %v2486_v13, %v1284_v20 }
 0x382   : > { %v2288_v22 = vpop.eup %2287  ;;  %v1103_v60 = vpop.xlane.xlu1 %1102 }
 0x383   : > { %v2290_v23 = vpop.eup %2289  ;;  %v1282_v21 = vmul.f32 %v2288_v22, %v1234_v19  ;;  %v1176_v6 = vmul.f32 0.03125, %v1103_v60  ;;  %v1324_v32 = vadd.f32 %v2480_v11, %v1304_v1 }
 0x384   : > { %v1285_v26 = vmul.f32 %v2290_v23, %v1237_v41 }
 0x385   : > { %v1302_v57 = vmul.f32 %v2486_v13, %v1282_v21  ;;  %v1208_v46 = vmul.f32 %v1176_v6, %v1176_v6  ;;  %v1340_v45 = vmul.f32 0.2, %v1324_v32  ;;  %v1240_v1 = vsub.f32 %v2723_v9, %v1176_v6 }
 0x386   : > { %v2292_v34 = vpop.eup %2291  ;;  %v1099_v36 = vpop.xlane.xlu1 %1098  ;;  %v1305_v10 = vmul.f32 %v2486_v13, %v1285_v26 }
 0x387   : > { %v1105_v37 = vpop.xlane.xlu0 %1104  ;;  %v1283_v38 = vmul.f32 %v2292_v34, %v1235_v29  ;;  %v1322_v62 = vadd.f32 %v2480_v11, %v1302_v57  ;;  %v1174_v40 = vmul.f32 0.03125, %v1099_v36  ;;  %v1356_v39 = vmax.f32 %v1324_v32, %v1340_v45 }
 0x388   : > { %v1325_v43 = vadd.f32 %v2480_v11, %v1305_v10  ;;  %v1177_v0 = vmul.f32 0.03125, %v1105_v37 }
 0x389   : > { %v1303_v56 = vmul.f32 %v2486_v13, %v1283_v38  ;;  %v1338_v24 = vmul.f32 0.2, %v1322_v62  ;;  %v1206_v30 = vmul.f32 %v1174_v40, %v1174_v40  ;;  %v1238_v34 = vsub.f32 %v2730_v52, %v1174_v40 }
 0x38a   : > { %v1151_v2 = vpop.xlane.xlu1 %1150  ;;  %v1341_v49 = vmul.f32 0.2, %v1325_v43  ;;  %v1209_v25 = vmul.f32 %v1177_v0, %v1177_v0  ;;  %v1241_v10 = vsub.f32 %v2733_v53, %v1177_v0 }
 0x38b   : > { %v1101_v44 = vpop.xlane.xlu0 %1100  ;;  %v1192_v47 = vmul.f32 0.03125, %v1151_v2  ;;  %v1323_v50 = vadd.f32 %v2480_v11, %v1303_v56  ;;  %v1354_v5 = vmax.f32 %v1322_v62, %v1338_v24 }
 0x38c   : > { %v1175_v35 = vmul.f32 0.03125, %v1101_v44  ;;  %v1357_v17 = vmax.f32 %v1325_v43, %v1341_v49 }
 0x38d   : > { %v1224_v51 = vsub.f32 %v1192_v47, %v1208_v46  ;;  %v1339_v42 = vmul.f32 0.2, %v1323_v50 }
 0x38e   : > { %v1147_v58 = vpop.xlane.xlu1 %1146  ;;  %v1207_v19 = vmul.f32 %v1175_v35, %v1175_v35  ;;  %v1371_v21 = vpack.c.bf16 %v1357_v17, %v1356_v39  ;;  %v1239_v2 = vsub.f32 %v2741_v54, %v1175_v35 }
 0x38f   : > { %v1153_v48 = vpop.xlane.xlu0 %1152  ;;  %v1256_v61 = vadd.f32 1e-05, %v1224_v51  ;;  %v1190_v3 = vmul.f32 0.03125, %v1147_v58  ;;  %v1355_v7 = vmax.f32 %v1323_v50, %v1339_v42 }
 0x390   : > { %v1193_v4 = vmul.f32 0.03125, %v1153_v48 }
 0x391   : > { %2293 = vrsqrt.f32 %v1256_v61  ;;  %v1222_v63 = vsub.f32 %v1190_v3, %v1206_v30  ;;  %v1370_v22 = vpack.c.bf16 %v1355_v7, %v1354_v5 }
 0x392   : > { %v1225_v15 = vsub.f32 %v1193_v4, %v1209_v25 }
 0x393   : > { %v1149_v20 = vpop.xlane.xlu0 %1148  ;;  %v1254_v41 = vadd.f32 1e-05, %v1222_v63  ;;  %2172 = vmatprep.mubr.bf16.mxu0 %v1370_v22 }
 0x394   : > { %v1257_v60 = vadd.f32 1e-05, %v1225_v15  ;;  %v1191_v23 = vmul.f32 0.03125, %v1149_v20  ;;  %2173 = vmatmul.mubr.bf16.vlgmr.msra.gmra.mxu0 %v1371_v21 }
 0x395   : > { %2295 = vrsqrt.f32 %v1254_v41 }
 0x396   : > { %v1223_v26 = vsub.f32 %v1191_v23, %v1207_v19  ;;  %2297 = vrsqrt.f32 %v1257_v60 }
 0x398   : > { %v1255_v29 = vadd.f32 1e-05, %v1223_v26 }
 0x39a   : > { %2299 = vrsqrt.f32 %v1255_v29 }
 0x39e   : > { %v2294_v57 = vpop.eup %2293 }
 0x39f   : > { %v1288_v36 = vmul.f32 %v2294_v57, %v1240_v1 }
 0x3a1   : > { %v1308_v56 = vmul.f32 %v2486_v13, %v1288_v36 }
 0x3a2   : > { %v2296_v37 = vpop.eup %2295  ;;  %v1111_v38 = vpop.xlane.xlu1 %1110 }
 0x3a3   : > { %v2298_v62 = vpop.eup %2297  ;;  %v1286_v43 = vmul.f32 %v2296_v37, %v1238_v34  ;;  %v1180_v52 = vmul.f32 0.03125, %v1111_v38  ;;  %v1328_v0 = vadd.f32 %v2480_v11, %v1308_v56 }
 0x3a4   : > { %v1289_v32 = vmul.f32 %v2298_v62, %v1241_v10 }
 0x3a5   : > { %v1306_v44 = vmul.f32 %v2486_v13, %v1286_v43  ;;  %v1212_v30 = vmul.f32 %v1180_v52, %v1180_v52  ;;  %v1344_v61 = vmul.f32 0.2, %v1328_v0 }
 0x3a6   : > { %v1107_v47 = vpop.xlane.xlu1 %1106  ;;  %v1113_v49 = vpop.xlane.xlu0 %1112  ;;  %v1309_v9 = vmul.f32 %v2486_v13, %v1289_v32  ;;  %v1244_v32 = vsub.f32 %v2768_v31, %v1180_v52 }
 0x3a7   : > { %v2300_v46 = vpop.eup %2299  ;;  %v1326_v40 = vadd.f32 %v2480_v11, %v1306_v44  ;;  %v1178_v50 = vmul.f32 0.03125, %v1107_v47  ;;  %v1181_v24 = vmul.f32 0.03125, %v1113_v49  ;;  %v1360_v21 = vmax.f32 %v1328_v0, %v1344_v61 }
 0x3a8   : > { %v1287_v6 = vmul.f32 %v2300_v46, %v1239_v2  ;;  %v1329_v53 = vadd.f32 %v2480_v11, %v1309_v9 }
 0x3a9   : > { %v1342_v48 = vmul.f32 0.2, %v1326_v40  ;;  %v1210_v3 = vmul.f32 %v1178_v50, %v1178_v50  ;;  %v1213_v4 = vmul.f32 %v1181_v24, %v1181_v24  ;;  %v1242_v47 = vsub.f32 %v2772_v55, %v1178_v50 }
 0x3aa   : > { %v1159_v54 = vpop.xlane.xlu1 %1158  ;;  %v1109_v51 = vpop.xlane.xlu0 %1108  ;;  %v1307_v45 = vmul.f32 %v2486_v13, %v1287_v6  ;;  %v1345_v35 = vmul.f32 0.2, %v1329_v53  ;;  %v1245_v9 = vsub.f32 %v2775_v18, %v1181_v24 }
 0x3ab   : > { %v1196_v25 = vmul.f32 0.03125, %v1159_v54  ;;  %v1179_v17 = vmul.f32 0.03125, %v1109_v51  ;;  %v1358_v22 = vmax.f32 %v1326_v40, %v1342_v48 }
 0x3ac   : > { %v1327_v58 = vadd.f32 %v2480_v11, %v1307_v45  ;;  %v1361_v20 = vmax.f32 %v1329_v53, %v1345_v35 }
 0x3ad   : > { %v1228_v42 = vsub.f32 %v1196_v25, %v1212_v30  ;;  %v1211_v26 = vmul.f32 %v1179_v17, %v1179_v17  ;;  %v1243_v52 = vsub.f32 %v2780_v59, %v1179_v17 }
 0x3ae   : > { %v1155_v5 = vpop.xlane.xlu1 %1154  ;;  %v1161_v7 = vpop.xlane.xlu0 %1160  ;;  %v1343_v63 = vmul.f32 0.2, %v1327_v58  ;;  %v1373_v37 = vpack.c.bf16 %v1361_v20, %v1360_v21 }
 0x3af   : > { %v1260_v15 = vadd.f32 1e-05, %v1228_v42  ;;  %v1194_v39 = vmul.f32 0.03125, %v1155_v5  ;;  %v1197_v19 = vmul.f32 0.03125, %v1161_v7 }
 0x3b0   : > { %v1359_v41 = vmax.f32 %v1327_v58, %v1343_v63 }
 0x3b1   : > { %2301 = vrsqrt.f32 %v1260_v15  ;;  %v1226_v60 = vsub.f32 %v1194_v39, %v1210_v3  ;;  %v1229_v23 = vsub.f32 %v1197_v19, %v1213_v4 }
 0x3b2   : > { %v1157_v29 = vpop.xlane.xlu0 %1156  ;;  %v1372_v57 = vpack.c.bf16 %v1359_v41, %v1358_v22 }
 0x3b3   : > { %v1258_v1 = vadd.f32 1e-05, %v1226_v60  ;;  %v1261_v34 = vadd.f32 1e-05, %v1229_v23  ;;  %v1195_v36 = vmul.f32 0.03125, %v1157_v29 }
 0x3b4   : > { %2176 = vmatprep.mubr.bf16.mxu0 %v1372_v57 }
 0x3b5   : > { %2303 = vrsqrt.f32 %v1258_v1  ;;  %v1227_v10 = vsub.f32 %v1195_v36, %v1211_v26  ;;  %2177 = vmatmul.mubr.bf16.gmra.mxu0 %v1373_v37 }
 0x3b6   : > { %2305 = vrsqrt.f32 %v1261_v34 }
 0x3b7   : > { %v1259_v38 = vadd.f32 1e-05, %v1227_v10 }
 0x3b9   : > { %2307 = vrsqrt.f32 %v1259_v38 }
 0x3ba   : > { %v1119_v62 = vpop.xlane.xlu1 %1118 }
 0x3bb   : > { %v2842_v6 = vmul.f32 0.03125, %v1119_v62 }
 0x3bd   : > { %v1216_v18 = vmul.f32 %v2842_v6, %v2842_v6 }
 0x3be   : > { %v2302_v43 = vpop.eup %2301  ;;  %v1115_v2 = vpop.xlane.xlu1 %1114 }
 0x3bf   : > { %v1121_v44 = vpop.xlane.xlu0 %1120  ;;  %v1182_v56 = vmul.f32 0.03125, %v1115_v2  ;;  %v1292_v46 = vmul.f32 %v2302_v43, %v1244_v32 }
 0x3c0   : > { %v1185_v24 = vmul.f32 0.03125, %v1121_v44 }
 0x3c1   : > { %v1214_v54 = vmul.f32 %v1182_v56, %v1182_v56  ;;  %v1312_v31 = vmul.f32 %v2486_v13, %v1292_v46  ;;  %v1246_v2 = vsub.f32 %v2796_v33, %v1182_v56 }
 0x3c2   : > { %v2304_v49 = vpop.eup %2303  ;;  %v1163_v40 = vpop.xlane.xlu1 %1162  ;;  %v1217_v20 = vmul.f32 %v1185_v24, %v1185_v24 }
 0x3c3   : > { %v1117_v53 = vpop.xlane.xlu0 %1116  ;;  %v2306_v0 = vpop.eup %2305  ;;  %v1198_v51 = vmul.f32 0.03125, %v1163_v40  ;;  %v1290_v30 = vmul.f32 %v2304_v49, %v1242_v47  ;;  %v1332_v59 = vadd.f32 %v2480_v11, %v1312_v31  ;;  %v1248_v47 = vsub.f32 %v2792_v28, %v2842_v6 }
 0x3c4   : > { %v1183_v45 = vmul.f32 0.03125, %v1117_v53  ;;  %v1293_v25 = vmul.f32 %v2306_v0, %v1245_v9 }
 0x3c5   : > { %v1230_v35 = vsub.f32 %v1198_v51, %v1214_v54  ;;  %v1310_v55 = vmul.f32 %v2486_v13, %v1290_v30  ;;  %v1348_v57 = vmul.f32 0.2, %v1332_v59  ;;  %v1249_v30 = vsub.f32 %v2799_v27, %v1185_v24 }
 0x3c6   : > { %v2308_v50 = vpop.eup %2307  ;;  %v1215_v58 = vmul.f32 %v1183_v45, %v1183_v45  ;;  %v1167_v48 = vpop.xlane.xlu1 %1166  ;;  %v1313_v61 = vmul.f32 %v2486_v13, %v1293_v25  ;;  %v1247_v40 = vsub.f32 %v2804_v16, %v1183_v45 }
 0x3c7   : > { %v1165_v42 = vpop.xlane.xlu0 %1164  ;;  %v1262_v3 = vadd.f32 1e-05, %v1230_v35  ;;  %v1200_v4 = vmul.f32 0.03125, %v1167_v48  ;;  %v1291_v7 = vmul.f32 %v2308_v50, %v1243_v52  ;;  %v1330_v63 = vadd.f32 %v2480_v11, %v1310_v55 }
 0x3c8   : > { %v1199_v5 = vmul.f32 0.03125, %v1165_v42  ;;  %v1333_v17 = vadd.f32 %v2480_v11, %v1313_v61  ;;  %v1364_v62 = vmax.f32 %v1332_v59, %v1348_v57 }
 0x3c9   : > { %2309 = vrsqrt.f32 %v1262_v3  ;;  %v1232_v15 = vsub.f32 %v1200_v4, %v1216_v18  ;;  %v1311_v19 = vmul.f32 %v2486_v13, %v1291_v7  ;;  %v1346_v41 = vmul.f32 0.2, %v1330_v63 }
 0x3ca   : > { %v1231_v39 = vsub.f32 %v1199_v5, %v1215_v58  ;;  %v1349_v60 = vmul.f32 0.2, %v1333_v17 }
 0x3cb   : > { %v1169_v22 = vpop.xlane.xlu0 %1168  ;;  %v1264_v23 = vadd.f32 1e-05, %v1232_v15  ;;  %v1331_v29 = vadd.f32 %v2480_v11, %v1311_v19  ;;  %v1362_v10 = vmax.f32 %v1330_v63, %v1346_v41 }
 0x3cc   : > { %v1263_v21 = vadd.f32 1e-05, %v1231_v39  ;;  %v1201_v26 = vmul.f32 0.03125, %v1169_v22  ;;  %v1365_v36 = vmax.f32 %v1333_v17, %v1349_v60 }
 0x3cd   : > { %2311 = vrsqrt.f32 %v1264_v23  ;;  %v1347_v34 = vmul.f32 0.2, %v1331_v29 }
 0x3ce   : > { %v1233_v1 = vsub.f32 %v1201_v26, %v1217_v20  ;;  %2313 = vrsqrt.f32 %v1263_v21  ;;  %v1375_v32 = vpack.c.bf16 %v1365_v36, %v1364_v62 }
 0x3cf   : > { %v1363_v38 = vmax.f32 %v1331_v29, %v1347_v34 }
 0x3d0   : > { %v1265_v37 = vadd.f32 1e-05, %v1233_v1 }
 0x3d1   : > { %v1374_v43 = vpack.c.bf16 %v1363_v38, %v1362_v10 }
 0x3d2   : > { %2315 = vrsqrt.f32 %v1265_v37 }
 0x3d3   : > { %2180 = vmatprep.mubr.bf16.mxu0 %v1374_v43 }
 0x3d4   : > { %2181 = vmatmul.mubr.bf16.gmra.mxu0 %v1375_v32 }
 0x3d6   : > { %v2310_v44 = vpop.eup %2309 }
 0x3d7   : > { %v1294_v46 = vmul.f32 %v2310_v44, %v1246_v2 }
 0x3d9   : > { %v1314_v49 = vmul.f32 %v2486_v13, %v1294_v46 }
 0x3da   : > { %v2312_v9 = vpop.eup %2311 }
 0x3db   : > { %v2314_v53 = vpop.eup %2313  ;;  %v1296_v0 = vmul.f32 %v2312_v9, %v1248_v47  ;;  %v1334_v51 = vadd.f32 %v2480_v11, %v1314_v49 }
 0x3dc   : > { %v1295_v54 = vmul.f32 %v2314_v53, %v1247_v40 }
 0x3dd   : > { %v1316_v25 = vmul.f32 %v2486_v13, %v1296_v0  ;;  %v1350_v52 = vmul.f32 0.2, %v1334_v51 }
 0x3de   : > { %v1315_v56 = vmul.f32 %v2486_v13, %v1295_v54 }
 0x3df   : > { %v2316_v33 = vpop.eup %2315  ;;  %v1336_v28 = vadd.f32 %v2480_v11, %v1316_v25  ;;  %v1366_v50 = vmax.f32 %v1334_v51, %v1350_v52  ;;  %v2377_v52 = vmov 0  }
 0x3e0   : > { %v1297_v31 = vmul.f32 %v2316_v33, %v1249_v30  ;;  %v1335_v6 = vadd.f32 %v2480_v11, %v1315_v56  ;;  %v2375_v56 = vmov 0.0   ;;  %2235 = vset.pattern.permute.xlu1 %v2377_v52  ;;  %2236 = vset.pattern.permute.xlu0 %v2377_v52 }
 0x3e1   : > { %v1352_v55 = vmul.f32 0.2, %v1336_v28  ;;  %2188 = vmatprep.subr.bf16.mxu1 %v2375_v56  ;;  %2204 = vmatprep.mubr.msk.bf16.mxu1 %vm2376_vm2, %v2375_v56 }
 0x3e2   : > { %v1317_v16 = vmul.f32 %v2486_v13, %v1297_v31  ;;  %v1351_v45 = vmul.f32 0.2, %v1335_v6 }
 0x3e3   : > { %v1368_v58 = vmax.f32 %v1336_v28, %v1352_v55 }
 0x3e4   : > { %v1337_v35 = vadd.f32 %v2480_v11, %v1317_v16  ;;  %v1367_v18 = vmax.f32 %v1335_v6, %v1351_v45  ;;  %v1833_v6 = vld [vmem:[%s3113_s8] sm:$0x7] }
 0x3e6   : > { %v1353_v27 = vmul.f32 0.2, %v1337_v35  ;;  %v1376_v24 = vpack.c.bf16 %v1367_v18, %v1366_v50 }
 0x3e8   : > { %v1369_v48 = vmax.f32 %v1337_v35, %v1353_v27  ;;  %2184 = vmatprep.mubr.bf16.mxu0 %v1376_v24 }
 0x3ea   : > { %v1377_v42 = vpack.c.bf16 %v1369_v48, %v1368_v58 }
 0x3ec   : > { %2185 = vmatmul.mubr.bf16.gmra.mxu0 %v1377_v42 }
 0x454   : > { %v2174_v61 = vpop.f32.mrf.mxu0 }
 0x455   : > { %v2869_v3 = vadd.f32 %v2174_v61, %v2473_v8 }
 0x456   : > { %v1481_v4 = vpop.f32.mrf.mxu0 }
 0x457   : > { %v2872_v13 = vadd.f32 %v1481_v4, %v2473_v8  ;;  %v1578_v33 = vmul.f32 %v2869_v3, %v2869_v3 }
 0x458   : > { %v2175_v5 = vpop.f32.mrf.mxu0 }
 0x459   : > { %v2875_v11 = vadd.f32 %v2175_v5, %v2473_v8  ;;  %v1576_v31 = vmul.f32 %v2872_v13, %v2872_v13 }
 0x45a   : > { %v1484_v7 = vpop.f32.mrf.mxu0 }
 0x45b   : > { %v2878_v63 = vadd.f32 %v1484_v7, %v2473_v8 }
 0x45d   : > { %v1577_v28 = vmul.f32 %v2878_v63, %v2878_v63 }
 0x475   : > { %v2178_v59 = vpop.f32.mrf.mxu0 }
 0x476   : > { %v2927_v49 = vadd.f32 %v2178_v59, %v2473_v8 }
 0x477   : > { %v1497_v17 = vpop.f32.mrf.mxu0 }
 0x478   : > { %v1582_v53 = vmul.f32 %v2927_v49, %v2927_v49  ;;  %v2939_v0 = vadd.f32 %v1497_v17, %v2473_v8 }
 0x479   : > { %v2179_v15 = vpop.f32.mrf.mxu0 }
 0x47a   : > { %v2933_v40 = vadd.f32 %v2179_v15, %v2473_v8  ;;  %v1580_v30 = vmul.f32 %v2939_v0, %v2939_v0 }
 0x47b   : > { %v1500_v39 = vpop.f32.mrf.mxu0 }
 0x47c   : > { %v1583_v54 = vmul.f32 %v2933_v40, %v2933_v40  ;;  %v2945_v51 = vadd.f32 %v1500_v39, %v2473_v8 }
 0x47e   : > { %v1581_v25 = vmul.f32 %v2945_v51, %v2945_v51 }
 0x494   : > { %v2182_v19 = vpop.f32.mrf.mxu0 }
 0x495   : > { %v2903_v38 = vadd.f32 %v2182_v19, %v2473_v8 }
 0x496   : > { %v1513_v20 = vpop.f32.mrf.mxu0 }
 0x497   : > { %v1586_v32 = vmul.f32 %v2903_v38, %v2903_v38  ;;  %v2915_v2 = vadd.f32 %v1513_v20, %v2473_v8 }
 0x498   : > { %v2183_v22 = vpop.f32.mrf.mxu0 }
 0x499   : > { %v2909_v43 = vadd.f32 %v2183_v22, %v2473_v8  ;;  %v1584_v47 = vmul.f32 %v2915_v2, %v2915_v2 }
 0x49a   : > { %v1516_v41 = vpop.f32.mrf.mxu0 }
 0x49b   : > { %v1587_v44 = vmul.f32 %v2909_v43, %v2909_v43  ;;  %v2921_v46 = vadd.f32 %v1516_v41, %v2473_v8 }
 0x49d   : > { %v1585_v9 = vmul.f32 %v2921_v46, %v2921_v46 }
 0x4ac   : > { %v2186_v60 = vpop.f32.mrf.mxu0 }
 0x4ad   : > { %v2881_v23 = vadd.f32 %v2186_v60, %v2473_v8 }
 0x4ae   : > { %v1529_v21 = vpop.f32.mrf.mxu0 }
 0x4af   : > { %1572 = vadd.xlane.f32.xlu1 %v2881_v23  ;;  %v1590_v57 = vmul.f32 %v2881_v23, %v2881_v23  ;;  %v2891_v1 = vadd.f32 %v1529_v21, %v2473_v8 }
 0x4b0   : > { %v2187_v26 = vpop.f32.mrf.mxu0 }
 0x4b1   : > { %v2885_v29 = vadd.f32 %v2187_v26, %v2473_v8  ;;  %v1588_v10 = vmul.f32 %v2891_v1, %v2891_v1 }
 0x4b2   : > { %v1532_v36 = vpop.f32.mrf.mxu0 }
 0x4b3   : > { %1620 = vadd.xlane.f32.xlu1 %v1590_v57  ;;  %1574 = vadd.xlane.f32.xlu0 %v2885_v29  ;;  %v1591_v34 = vmul.f32 %v2885_v29, %v2885_v29  ;;  %v2897_v37 = vadd.f32 %v1532_v36, %v2473_v8  ;;  %v1579_v8 = vmul.f32 %v2875_v11, %v2875_v11 }
 0x4b5   : > { %v1589_v62 = vmul.f32 %v2897_v37, %v2897_v37 }
 0x4b7   : > { %1622 = vadd.xlane.f32.xlu0 %v1591_v34  ;;  %1568 = vadd.xlane.f32.xlu1 %v2891_v1 }
 0x4bb   : > { %1570 = vadd.xlane.f32.xlu0 %v2897_v37  ;;  %1616 = vadd.xlane.f32.xlu1 %v1588_v10 }
 0x4bf   : > { %1618 = vadd.xlane.f32.xlu0 %v1589_v62  ;;  %1564 = vadd.xlane.f32.xlu1 %v2903_v38 }
 0x4c3   : > { %1566 = vadd.xlane.f32.xlu0 %v2909_v43  ;;  %1612 = vadd.xlane.f32.xlu1 %v1586_v32 }
 0x4c7   : > { %1614 = vadd.xlane.f32.xlu0 %v1587_v44  ;;  %1560 = vadd.xlane.f32.xlu1 %v2915_v2 }
 0x4cb   : > { %1562 = vadd.xlane.f32.xlu0 %v2921_v46  ;;  %1608 = vadd.xlane.f32.xlu1 %v1584_v47 }
 0x4cf   : > { %1610 = vadd.xlane.f32.xlu0 %v1585_v9  ;;  %1556 = vadd.xlane.f32.xlu1 %v2927_v49 }
 0x4d3   : > { %1558 = vadd.xlane.f32.xlu0 %v2933_v40  ;;  %1604 = vadd.xlane.f32.xlu1 %v1582_v53 }
 0x4d7   : > { %1606 = vadd.xlane.f32.xlu0 %v1583_v54  ;;  %1552 = vadd.xlane.f32.xlu1 %v2939_v0 }
 0x4db   : > { %1554 = vadd.xlane.f32.xlu0 %v2945_v51  ;;  %1600 = vadd.xlane.f32.xlu1 %v1580_v30 }
 0x4df   : > { %1602 = vadd.xlane.f32.xlu0 %v1581_v25  ;;  %1548 = vadd.xlane.f32.xlu1 %v2869_v3 }
 0x4e3   : > { %1550 = vadd.xlane.f32.xlu0 %v2875_v11  ;;  %1596 = vadd.xlane.f32.xlu1 %v1578_v33 }
 0x4e7   : > { %1598 = vadd.xlane.f32.xlu0 %v1579_v8  ;;  %1544 = vadd.xlane.f32.xlu1 %v2872_v13 }
 0x4eb   : > { %1546 = vadd.xlane.f32.xlu0 %v2878_v63  ;;  %1592 = vadd.xlane.f32.xlu1 %v1576_v31 }
 0x4ef   : > { %1594 = vadd.xlane.f32.xlu0 %v1577_v28 }
 0x4fc   : > { %1836 = vperm.xlu1 %2235, %v1833_v6  }
 0x538   : > { %v1573_v16 = vpop.xlane.xlu1 %1572 }
 0x539   : > { %v1638_v45 = vmul.f32 0.03125, %v1573_v16 }
 0x53b   : > { %v1670_v50 = vmul.f32 %v1638_v45, %v1638_v45  ;;  %v1702_v53 = vsub.f32 %v2881_v23, %v1638_v45 }
 0x53c   : > { %v1621_v35 = vpop.xlane.xlu1 %1620  ;;  %v1575_v55 = vpop.xlane.xlu0 %1574 }
 0x53d   : > { %v1654_v18 = vmul.f32 0.03125, %v1621_v35  ;;  %v1639_v27 = vmul.f32 0.03125, %v1575_v55 }
 0x53f   : > { %v1686_v24 = vsub.f32 %v1654_v18, %v1670_v50  ;;  %v1671_v61 = vmul.f32 %v1639_v27, %v1639_v27  ;;  %v1703_v16 = vsub.f32 %v2885_v29, %v1639_v27 }
 0x540   : > { %v1623_v58 = vpop.xlane.xlu0 %1622  ;;  %v1569_v48 = vpop.xlane.xlu1 %1568 }
 0x541   : > { %v1718_v42 = vadd.f32 1e-05, %v1686_v24  ;;  %v1655_v4 = vmul.f32 0.03125, %v1623_v58  ;;  %v1636_v5 = vmul.f32 0.03125, %v1569_v48 }
 0x543   : > { %2317 = vrsqrt.f32 %v1718_v42  ;;  %v1687_v7 = vsub.f32 %v1655_v4, %v1671_v61  ;;  %v1668_v39 = vmul.f32 %v1636_v5, %v1636_v5  ;;  %v1700_v4 = vsub.f32 %v2891_v1, %v1636_v5 }
 0x544   : > { %v1571_v59 = vpop.xlane.xlu0 %1570  ;;  %v1617_v17 = vpop.xlane.xlu1 %1616 }
 0x545   : > { %v1719_v15 = vadd.f32 1e-05, %v1687_v7  ;;  %v2969_v19 = vmul.f32 0.03125, %v1571_v59  ;;  %v1652_v20 = vmul.f32 0.03125, %v1617_v17 }
 0x547   : > { %2319 = vrsqrt.f32 %v1719_v15  ;;  %v1684_v22 = vsub.f32 %v1652_v20, %v1668_v39  ;;  %v1669_v21 = vmul.f32 %v2969_v19, %v2969_v19  ;;  %v1701_v1 = vsub.f32 %v2897_v37, %v2969_v19 }
 0x548   : > { %v1619_v41 = vpop.xlane.xlu0 %1618  ;;  %v1565_v60 = vpop.xlane.xlu1 %1564 }
 0x549   : > { %v1716_v26 = vadd.f32 1e-05, %v1684_v22  ;;  %v1653_v57 = vmul.f32 0.03125, %v1619_v41  ;;  %v2973_v34 = vmul.f32 0.03125, %v1565_v60 }
 0x54b   : > { %2321 = vrsqrt.f32 %v1716_v26  ;;  %v1685_v36 = vsub.f32 %v1653_v57, %v1669_v21  ;;  %v1666_v44 = vmul.f32 %v2973_v34, %v2973_v34  ;;  %v1698_v19 = vsub.f32 %v2903_v38, %v2973_v34 }
 0x54c   : > { %v1567_v10 = vpop.xlane.xlu0 %1566  ;;  %v1613_v62 = vpop.xlane.xlu1 %1612 }
 0x54d   : > { %v1717_v32 = vadd.f32 1e-05, %v1685_v36  ;;  %v2977_v47 = vmul.f32 0.03125, %v1567_v10  ;;  %v1650_v9 = vmul.f32 0.03125, %v1613_v62 }
 0x54f   : > { %2323 = vrsqrt.f32 %v1717_v32  ;;  %v1682_v54 = vsub.f32 %v1650_v9, %v1666_v44  ;;  %v1667_v25 = vmul.f32 %v2977_v47, %v2977_v47  ;;  %v1699_v34 = vsub.f32 %v2909_v43, %v2977_v47 }
 0x550   : > { %v2318_v30 = vpop.eup %2317  ;;  %v1615_v33 = vpop.xlane.xlu0 %1614 }
 0x551   : > { %v1561_v8 = vpop.xlane.xlu1 %1560  ;;  %v1714_v31 = vadd.f32 1e-05, %v1682_v54  ;;  %v1651_v28 = vmul.f32 0.03125, %v1615_v33  ;;  %v1750_v52 = vmul.f32 %v2318_v30, %v1702_v53 }
 0x552   : > { %v2982_v6 = vmul.f32 0.03125, %v1561_v8 }
 0x553   : > { %2325 = vrsqrt.f32 %v1714_v31  ;;  %v1683_v35 = vsub.f32 %v1651_v28, %v1667_v25  ;;  %v1770_v18 = vmul.f32 %v2489_v14, %v1750_v52 }
 0x554   : > { %v2320_v55 = vpop.eup %2319  ;;  %v1664_v23 = vmul.f32 %v2982_v6, %v2982_v6  ;;  %v1563_v45 = vpop.xlane.xlu0 %1562 }
 0x555   : > { %v1609_v50 = vpop.xlane.xlu1 %1608  ;;  %v1715_v24 = vadd.f32 1e-05, %v1683_v35  ;;  %v2988_v58 = vmul.f32 0.03125, %v1563_v45  ;;  %v1751_v42 = vmul.f32 %v2320_v55, %v1703_v16  ;;  %v1790_v61 = vadd.f32 %v2483_v12, %v1770_v18 }
 0x556   : > { %v1648_v48 = vmul.f32 0.03125, %v1609_v50 }
 0x557   : > { %2327 = vrsqrt.f32 %v1715_v24  ;;  %v1665_v7 = vmul.f32 %v2988_v58, %v2988_v58  ;;  %v1771_v15 = vmul.f32 %v2489_v14, %v1751_v42  ;;  %v1806_v21 = vmul.f32 0.2, %v1790_v61 }
 0x558   : > { %v1680_v29 = vsub.f32 %v1648_v48, %v1664_v23  ;;  %v2322_v27 = vpop.eup %2321  ;;  %v1611_v59 = vpop.xlane.xlu0 %1610 }
 0x559   : > { %v1557_v17 = vpop.xlane.xlu1 %1556  ;;  %v1649_v20 = vmul.f32 0.03125, %v1611_v59  ;;  %v1748_v41 = vmul.f32 %v2322_v27, %v1700_v4  ;;  %v1791_v60 = vadd.f32 %v2483_v12, %v1771_v15  ;;  %v1822_v30 = vmax.f32 %v1790_v61, %v1806_v21 }
 0x55a   : > { %v1712_v39 = vadd.f32 1e-05, %v1680_v29  ;;  %v2995_v22 = vmul.f32 0.03125, %v1557_v17 }
 0x55b   : > { %v1681_v5 = vsub.f32 %v1649_v20, %v1665_v7  ;;  %v1807_v62 = vmul.f32 0.2, %v1791_v60  ;;  %v1768_v32 = vmul.f32 %v2489_v14, %v1748_v41  ;;  %v1696_v20 = vsub.f32 %v2915_v2, %v2982_v6 }
 0x55c   : > { %2329 = vrsqrt.f32 %v1712_v39  ;;  %v2324_v26 = vpop.eup %2323  ;;  %v1662_v57 = vmul.f32 %v2995_v22, %v2995_v22  ;;  %v1559_v36 = vpop.xlane.xlu0 %1558  ;;  %v1697_v6 = vsub.f32 %v2921_v46, %v2988_v58 }
 0x55d   : > { %v1605_v10 = vpop.xlane.xlu1 %1604  ;;  %v1713_v44 = vadd.f32 1e-05, %v1681_v5  ;;  %v3003_v9 = vmul.f32 0.03125, %v1559_v36  ;;  %v1749_v54 = vmul.f32 %v2324_v26, %v1701_v1  ;;  %v1823_v25 = vmax.f32 %v1791_v60, %v1807_v62 }
 0x55e   : > { %v1646_v53 = vmul.f32 0.03125, %v1605_v10  ;;  %v1788_v37 = vadd.f32 %v2483_v12, %v1768_v32 }
 0x55f   : > { %2331 = vrsqrt.f32 %v1713_v44  ;;  %v1663_v31 = vmul.f32 %v3003_v9, %v3003_v9  ;;  %v1832_v16 = vpack.c.bf16 %v1823_v25, %v1822_v30  ;;  %v1769_v35 = vmul.f32 %v2489_v14, %v1749_v54 }
 0x560   : > { %v1678_v33 = vsub.f32 %v1646_v53, %v1662_v57  ;;  %v2326_v8 = vpop.eup %2325  ;;  %v1607_v28 = vpop.xlane.xlu0 %1606  ;;  %v1804_v38 = vmul.f32 0.2, %v1788_v37 }
 0x561   : > { %v1553_v52 = vpop.xlane.xlu1 %1552  ;;  %v1647_v23 = vmul.f32 0.03125, %v1607_v28  ;;  %v1746_v50 = vmul.f32 %v2326_v8, %v1698_v19  ;;  %2189 = vmatpush3.bf16.xpose.msra.mxu1 %v1832_v16  ;;  %v1789_v18 = vadd.f32 %v2483_v12, %v1769_v35  ;;  %v1694_v35 = vsub.f32 %v2927_v49, %v2995_v22 }
 0x562   : > { %v1710_v55 = vadd.f32 1e-05, %v1678_v33  ;;  %v3011_v45 = vmul.f32 0.03125, %v1553_v52  ;;  %2190 = vmatprep.subr.bf16.mxu1 %v2375_v56  ;;  %v1820_v39 = vmax.f32 %v1788_v37, %v1804_v38  ;;  %v1695_v22 = vsub.f32 %v2933_v40, %v3003_v9 }
 0x563   : > { %v1679_v24 = vsub.f32 %v1647_v23, %v1663_v31  ;;  %v1805_v29 = vmul.f32 0.2, %v1789_v18  ;;  %v1766_v27 = vmul.f32 %v2489_v14, %v1746_v50 }
 0x564   : > { %2333 = vrsqrt.f32 %v1710_v55  ;;  %v2328_v48 = vpop.eup %2327  ;;  %v1660_v42 = vmul.f32 %v3011_v45, %v3011_v45  ;;  %v1555_v61 = vpop.xlane.xlu0 %1554 }
 0x565   : > { %v1601_v4 = vpop.xlane.xlu1 %1600  ;;  %v1711_v7 = vadd.f32 1e-05, %v1679_v24  ;;  %v3020_v59 = vmul.f32 0.03125, %v1555_v61  ;;  %v1747_v15 = vmul.f32 %v2328_v48, %v1699_v34  ;;  %v1821_v43 = vmax.f32 %v1789_v18, %v1805_v29 }
 0x566   : > { %v1644_v17 = vmul.f32 0.03125, %v1601_v4  ;;  %v1786_v47 = vadd.f32 %v2483_v12, %v1766_v27 }
 0x567   : > { %2335 = vrsqrt.f32 %v1711_v7  ;;  %v1661_v21 = vmul.f32 %v3020_v59, %v3020_v59  ;;  %v1831_v26 = vpack.c.bf16 %v1821_v43, %v1820_v39  ;;  %v1767_v57 = vmul.f32 %v2489_v14, %v1747_v15 }
 0x568   : > { %v1676_v41 = vsub.f32 %v1644_v17, %v1660_v42  ;;  %v1603_v1 = vpop.xlane.xlu0 %1602  ;;  %v1802_v2 = vmul.f32 0.2, %v1786_v47 }
 0x569   : > { %v2330_v60 = vpop.eup %2329  ;;  %v1549_v5 = vpop.xlane.xlu1 %1548  ;;  %v1645_v10 = vmul.f32 0.03125, %v1603_v1  ;;  %2191 = vmatpush3.bf16.xpose.msra.mxu1 %v1831_v26  ;;  %v1787_v44 = vadd.f32 %v2483_v12, %v1767_v57 }
 0x56a   : > { %v1708_v36 = vadd.f32 1e-05, %v1676_v41  ;;  %v3028_v62 = vmul.f32 0.03125, %v1549_v5  ;;  %v1744_v32 = vmul.f32 %v2330_v60, %v1696_v20  ;;  %2192 = vmatprep.subr.bf16.mxu1 %v2375_v56  ;;  %v1818_v16 = vmax.f32 %v1786_v47, %v1802_v2 }
 0x56b   : > { %v1677_v53 = vsub.f32 %v1645_v10, %v1661_v21  ;;  %v1803_v19 = vmul.f32 0.2, %v1787_v44  ;;  %v1692_v5 = vsub.f32 %v2939_v0, %v3011_v45  ;;  %v1693_v0 = vsub.f32 %v2945_v51, %v3020_v59 }
 0x56c   : > { %2337 = vrsqrt.f32 %v1708_v36  ;;  %v2332_v54 = vpop.eup %2331  ;;  %v1658_v30 = vmul.f32 %v3028_v62, %v3028_v62  ;;  %v1551_v25 = vpop.xlane.xlu0 %1550  ;;  %v1764_v33 = vmul.f32 %v2489_v14, %v1744_v32 }
 0x56d   : > { %v1597_v37 = vpop.xlane.xlu1 %1596  ;;  %v1709_v8 = vadd.f32 1e-05, %v1677_v53  ;;  %v3037_v31 = vmul.f32 0.03125, %v1551_v25  ;;  %v1745_v52 = vmul.f32 %v2332_v54, %v1697_v6  ;;  %v1819_v46 = vmax.f32 %v1787_v44, %v1803_v19 }
 0x56e   : > { %v1642_v28 = vmul.f32 0.03125, %v1597_v37  ;;  %v1784_v58 = vadd.f32 %v2483_v12, %v1764_v33 }
 0x56f   : > { %2339 = vrsqrt.f32 %v1709_v8  ;;  %v1659_v50 = vmul.f32 %v3037_v31, %v3037_v31  ;;  %v1830_v34 = vpack.c.bf16 %v1819_v46, %v1818_v16  ;;  %v1765_v24 = vmul.f32 %v2489_v14, %v1745_v52 }
 0x570   : > { %v1674_v55 = vsub.f32 %v1642_v28, %v1658_v30  ;;  %v1599_v18 = vpop.xlane.xlu0 %1598  ;;  %v1800_v49 = vmul.f32 0.2, %v1784_v58  ;;  %v1690_v46 = vsub.f32 %v2869_v3, %v3028_v62 }
 0x571   : > { %v2334_v23 = vpop.eup %2333  ;;  %v1545_v38 = vpop.xlane.xlu1 %1544  ;;  %v1643_v42 = vmul.f32 0.03125, %v1599_v18  ;;  %2193 = vmatpush3.bf16.xpose.msra.mxu1 %v1830_v34  ;;  %v1785_v29 = vadd.f32 %v2483_v12, %v1765_v24 }
 0x572   : > { %v1706_v48 = vadd.f32 1e-05, %v1674_v55  ;;  %v3045_v61 = vmul.f32 0.03125, %v1545_v38  ;;  %v1742_v4 = vmul.f32 %v2334_v23, %v1694_v35  ;;  %2194 = vmatprep.subr.bf16.mxu1 %v2375_v56  ;;  %v1816_v1 = vmax.f32 %v1784_v58, %v1800_v49 }
 0x573   : > { %v1675_v27 = vsub.f32 %v1643_v42, %v1659_v50  ;;  %v1801_v43 = vmul.f32 0.2, %v1785_v29  ;;  %v1691_v50 = vsub.f32 %v2875_v11, %v3037_v31 }
 0x574   : > { %2341 = vrsqrt.f32 %v1706_v48  ;;  %v2336_v7 = vpop.eup %2335  ;;  %v1656_v17 = vmul.f32 %v3045_v61, %v3045_v61  ;;  %v1547_v15 = vpop.xlane.xlu0 %1546  ;;  %v1762_v47 = vmul.f32 %v2489_v14, %v1742_v4  ;;  %v1688_v42 = vsub.f32 %v2872_v13, %v3045_v61 }
 0x575   : > { %v1593_v39 = vpop.xlane.xlu1 %1592  ;;  %v1707_v20 = vadd.f32 1e-05, %v1675_v27  ;;  %v3054_v41 = vmul.f32 0.03125, %v1547_v15  ;;  %v1743_v21 = vmul.f32 %v2336_v7, %v1695_v22  ;;  %v1817_v40 = vmax.f32 %v1785_v29, %v1801_v43 }
 0x576   : > { %v1640_v60 = vmul.f32 0.03125, %v1593_v39  ;;  %v1782_v9 = vadd.f32 %v2483_v12, %v1762_v47 }
 0x577   : > { %2343 = vrsqrt.f32 %v1707_v20  ;;  %v1829_v10 = vpack.c.bf16 %v1817_v40, %v1816_v1  ;;  %v1763_v32 = vmul.f32 %v2489_v14, %v1743_v21  ;;  %v1657_v44 = vmul.f32 %v3054_v41, %v3054_v41 }
 0x578   : > { %v1672_v26 = vsub.f32 %v1640_v60, %v1656_v17  ;;  %v1595_v36 = vpop.xlane.xlu0 %1594  ;;  %v1798_v30 = vmul.f32 0.2, %v1782_v9  ;;  %v1689_v27 = vsub.f32 %v2878_v63, %v3054_v41 }
 0x579   : > { %v2338_v57 = vpop.eup %2337  ;;  %v1641_v6 = vmul.f32 0.03125, %v1595_v36  ;;  %2195 = vmatpush3.bf16.xpose.msra.mxu1 %v1829_v10  ;;  %v1783_v54 = vadd.f32 %v2483_v12, %v1763_v32 }
 0x57a   : > { %v1704_v2 = vadd.f32 1e-05, %v1672_v26  ;;  %v1740_v53 = vmul.f32 %v2338_v57, %v1692_v5  ;;  %2196 = vmatprep.subr.bf16.mxu1 %v2375_v56  ;;  %v1814_v52 = vmax.f32 %v1782_v9, %v1798_v30  ;;  %v1824_v9 = vld [vmem:[%s3112_s7] sm:$0x3]  ;;  %v1837_v5 = vpop.permute.xlu1 %1836 }
 0x57b   : > { %v1673_v45 = vsub.f32 %v1641_v6, %v1657_v44  ;;  %v1799_v19 = vmul.f32 0.2, %v1783_v54 }
 0x57c   : > { %2345 = vrsqrt.f32 %v1704_v2  ;;  %v1760_v25 = vmul.f32 %v2489_v14, %v1740_v53  ;;  %v2340_v37 = vpop.eup %2339 }
 0x57d   : > { %v1705_v33 = vadd.f32 1e-05, %v1673_v45  ;;  %v1741_v8 = vmul.f32 %v2340_v37, %v1693_v0  ;;  %v1815_v16 = vmax.f32 %v1783_v54, %v1799_v19 }
 0x57e   : > { %v1780_v28 = vadd.f32 %v2483_v12, %v1760_v25 }
 0x57f   : > { %2347 = vrsqrt.f32 %v1705_v33  ;;  %v1761_v51 = vmul.f32 %v2489_v14, %v1741_v8  ;;  %v1828_v58 = vpack.c.bf16 %v1815_v16, %v1814_v52 }
 0x580   : > { %v1796_v55 = vmul.f32 0.2, %v1780_v28 }
 0x581   : > { %v2342_v59 = vpop.eup %2341  ;;  %v1781_v35 = vadd.f32 %v2483_v12, %v1761_v51  ;;  %2197 = vmatpush3.bf16.xpose.msra.mxu1 %v1828_v58 }
 0x582   : > { %v1738_v23 = vmul.f32 %v2342_v59, %v1690_v46  ;;  %2198 = vmatprep.subr.bf16.mxu1 %v2375_v56  ;;  %v1812_v3 = vmax.f32 %v1780_v28, %v1796_v55 }
 0x583   : > { %v1797_v18 = vmul.f32 0.2, %v1781_v35 }
 0x584   : > { %v1758_v38 = vmul.f32 %v2489_v14, %v1738_v23  ;;  %v2344_v34 = vpop.eup %2343 }
 0x585   : > { %v1813_v62 = vmax.f32 %v1781_v35, %v1797_v18  ;;  %v1739_v24 = vmul.f32 %v2344_v34, %v1691_v50 }
 0x586   : > { %v1778_v48 = vadd.f32 %v2483_v12, %v1758_v38 }
 0x587   : > { %v1827_v4 = vpack.c.bf16 %v1813_v62, %v1812_v3  ;;  %v1759_v29 = vmul.f32 %v2489_v14, %v1739_v24 }
 0x588   : > { %v1794_v31 = vmul.f32 0.2, %v1778_v48 }
 0x589   : > { %v2346_v49 = vpop.eup %2345  ;;  %v1779_v11 = vadd.f32 %v2483_v12, %v1759_v29  ;;  %2199 = vmatpush3.bf16.xpose.msra.mxu1 %v1827_v4 }
 0x58a   : > { %v1736_v22 = vmul.f32 %v2346_v49, %v1688_v42  ;;  %2200 = vmatprep.subr.bf16.mxu1 %v2375_v56  ;;  %v1810_v39 = vmax.f32 %v1778_v48, %v1794_v31 }
 0x58b   : > { %v1795_v7 = vmul.f32 0.2, %v1779_v11 }
 0x58c   : > { %v1756_v17 = vmul.f32 %v2489_v14, %v1736_v22  ;;  %v2348_v15 = vpop.eup %2347 }
 0x58d   : > { %v1811_v13 = vmax.f32 %v1779_v11, %v1795_v7  ;;  %v1737_v61 = vmul.f32 %v2348_v15, %v1689_v27 }
 0x58e   : > { %v1776_v43 = vadd.f32 %v2483_v12, %v1756_v17 }
 0x58f   : > { %v1826_v47 = vpack.c.bf16 %v1811_v13, %v1810_v39  ;;  %v1757_v20 = vmul.f32 %v2489_v14, %v1737_v61 }
 0x590   : > { %v1792_v21 = vmul.f32 0.2, %v1776_v43 }
 0x591   : > { %v1777_v60 = vadd.f32 %v2483_v12, %v1757_v20  ;;  %2201 = vmatpush3.bf16.xpose.msra.mxu1 %v1826_v47 }
 0x592   : > { %2202 = vmatprep.subr.bf16.mxu1 %v2375_v56  ;;  %v1808_v41 = vmax.f32 %v1776_v43, %v1792_v21 }
 0x593   : > { %v1793_v63 = vmul.f32 0.2, %v1777_v60 }
 0x595   : > { %v1809_v1 = vmax.f32 %v1777_v60, %v1793_v63 }
 0x597   : > { %v1825_v40 = vpack.c.bf16 %v1809_v1, %v1808_v41 }
 0x599   : > { %2203 = vmatpush3.bf16.xpose.msra.mxu1 %v1825_v40 }
 0x5a0   : > { %2205 = vmatmul.mubr.bf16.vlgmr.msra.gmra.mxu1 %v1824_v9 }
 0x660   : > { %v1873_v26 = vpop.f32.mrf.mxu1 }
 0x661   : > { %v1874_v14 = vadd.f32 %v1873_v26, %v1837_v5 }
 0x662   : > { %v2206_v57 = vpop.f32.mrf.mxu1 }
 0x663   : > { %2349 = vtanh.f32 %v1874_v14 }
 0x664   : > { %v1876_v12 = vpop.f32.mrf.mxu1 }
 0x666   : > { %v2207_v36 = vpop.f32.mrf.mxu1 }
 0x670   : > { %v2350_v56 = vpop.eup %2349 }
 0x671   : > { %1880 = vst [vmem:[%s392_s16] sm:$0x7] %v2350_v56 }
 0x672 PF: > { %s19_s11 = sadd.s32 1, %s2373_s11   ;;  %s3115_s30 = smov %s2369_s10 }
 0x673   : > { %p16_p5 = scmp.ge.s32.totalorder %s19_s11, 4   ;;  %s3116_s10 = smov %s3118_s12 }
 0x675   :  { %18 = sbr.rel (!%p16_p5) target bundleno = 2 (0x2), region = 93 }

</bundles_post_ra>
